<compile_context>
chip_gen: v7x
topology: tpu7x:2x2x1
jax: 0.10.0
libtpu: 0.0.40
codegen_flags: <defaults>
</compile_context>

<pallas_src>
import jax
import jax.numpy as jnp
from jax.experimental import pallas as pl
from jax.experimental.pallas import tpu as pltpu


def decoder_kernel(x_ref, h0_ref, c0_ref,
                   wih0_ref, whh0_ref, b0_ref,
                   wih1_ref, whh1_ref, b1_ref,
                   wfc_ref, bfc_ref,
                   pred_ref, hout_ref, cout_ref,
                   hbuf_ref):
    """Whole T-step, 2-layer LSTM recurrence + batched FC head in one invocation.

    x_ref:    (T*B, I)  time-major flattened input (row block t*B:(t+1)*B is step t).
    h0_ref:   (2, B, H) initial hidden state (layer 0, layer 1).
    c0_ref:   (2, B, H) initial cell state.
    wih0_ref: (I, 4H)   W_ih_l0^T, gate columns reordered to (i, f, o, g).
    whh0_ref: (H, 4H)   W_hh_l0^T, same column order.
    b0_ref:   (1, 4H)   b_ih_l0 + b_hh_l0, same column order.
    wih1_ref/whh1_ref/b1_ref: layer-1 analogues ((H,4H), (H,4H), (1,4H)).
    wfc_ref:  (H, O), bfc_ref: (1, O)   linear head.
    Outputs:  pred (T*B, O) time-major, hout/cout (2, B, H).
    Scratch:  hbuf (T*B, H) f32 — per-step layer-1 hidden states for the FC head.
    """
    TB, _ = x_ref.shape
    B = hout_ref.shape[1]
    H = hout_ref.shape[-1]
    T = TB // B

    whh0 = whh0_ref[...]
    wih1 = wih1_ref[...]
    whh1 = whh1_ref[...]

    # --- Hoisted work (off the serial recurrence) -----------------------------
    # Layer-0 input projection for ALL time steps in one matmul; b0 folded in.
    xw0 = (jnp.dot(x_ref[...], wih0_ref[...],
                   preferred_element_type=jnp.float32) + b0_ref[...])      # (T*B, 4H)
    # Layer-1 bias broadcast done once (JAX does not CSE broadcast_in_dim).
    b1b = jnp.broadcast_to(b1_ref[...], (B, 4 * H))                        # (B, 4H)

    # Initial state, read once.
    h_l0 = h0_ref[0]
    c_l0 = c0_ref[0]
    h_l1 = h0_ref[1]
    c_l1 = c0_ref[1]

    def lstm_gates(g, c):
        """Activate pre-gates with column order (i, f, o, g): 2 EUP pushes."""
        sig = jax.nn.sigmoid(g[:, :3 * H])        # i, f, o in one contiguous push
        gg = jnp.tanh(g[:, 3 * H:])               # candidate
        i = sig[:, 0 * H:1 * H]
        f = sig[:, 1 * H:2 * H]
        o = sig[:, 2 * H:3 * H]
        c_new = f * c + i * gg
        h_new = o * jnp.tanh(c_new)
        return h_new, c_new

    # --- Serial recurrence (T is small and static -> fully unrolled) ----------
    for t in range(T):
        # Layer 0: recurrent matmul only; input projection already done.
        g0 = (jnp.dot(h_l0, whh0, preferred_element_type=jnp.float32)
              + xw0[t * B:(t + 1) * B, :])
        h_l0, c_l0 = lstm_gates(g0, c_l0)

        # Layer 1: two dots, no concat (dropout is identity in eval mode).
        g1 = (jnp.dot(h_l0, wih1, preferred_element_type=jnp.float32)
              + jnp.dot(h_l1, whh1, preferred_element_type=jnp.float32)
              + b1b)
        h_l1, c_l1 = lstm_gates(g1, c_l1)

        # Stash layer-1 hidden for the batched FC head (not on the h-chain).
        hbuf_ref[pl.ds(t * B, B), :] = h_l1

    # --- Batched FC head: one matmul, one writeback ----------------------------
    pred_ref[...] = (jnp.dot(hbuf_ref[...], wfc_ref[...],
                             preferred_element_type=jnp.float32)
                     + bfc_ref[...]).astype(pred_ref.dtype)

    # Final state written back exactly once.
    hout_ref[0] = h_l0
    hout_ref[1] = h_l1
    cout_ref[0] = c_l0
    cout_ref[1] = c_l1


def _reorder_gate_rows(w):
    """PyTorch gate-row order (i, f, g, o) -> (i, f, o, g); returns transposed (K, 4H)."""
    i, f, g, o = jnp.split(w, 4, axis=0)
    return jnp.concatenate([i, f, o, g], axis=0).T


def _reorder_gate_bias(b_ih, b_hh):
    b = b_ih + b_hh
    i, f, g, o = jnp.split(b, 4)
    return jnp.concatenate([i, f, o, g]).reshape(1, -1)


@jax.jit
def decoder_forward(x, rain_forecast, hidden, cell, params):
    """Mirrors Decoder.forward(x, rain_forecast, hidden, cell). `x` is unused."""
    del x  # unused in the PyTorch forward as well
    B, T, I = rain_forecast.shape
    L, _, H = hidden.shape
    assert L == 2, "kernel implements the 2-layer LSTM of the reference module"
    O = params["w_fc"].shape[0]

    # Weight prep (wrapper-side, free): transpose, reorder gate columns, fold biases.
    wih0 = _reorder_gate_rows(params["w_ih_l0"])                    # (I, 4H)
    whh0 = _reorder_gate_rows(params["w_hh_l0"])                    # (H, 4H)
    b0 = _reorder_gate_bias(params["b_ih_l0"], params["b_hh_l0"])   # (1, 4H)
    wih1 = _reorder_gate_rows(params["w_ih_l1"])                    # (H, 4H)
    whh1 = _reorder_gate_rows(params["w_hh_l1"])                    # (H, 4H)
    b1 = _reorder_gate_bias(params["b_ih_l1"], params["b_hh_l1"])   # (1, 4H)
    wfc = params["w_fc"].T                                          # (H, O)
    bfc = params["b_fc"].reshape(1, O)

    # Time-major, flattened input so the hoisted projection / per-step slices are
    # clean contiguous row blocks (one-time few-KB transpose in the wrapper).
    x_tm = jnp.transpose(rain_forecast.astype(jnp.float32), (1, 0, 2)).reshape(T * B, I)

    def vmem_spec():
        return pl.BlockSpec(memory_space=pltpu.MemorySpace.VMEM)

    pred_tm, h_out, c_out = pl.pallas_call(
        decoder_kernel,
        out_shape=(
            jax.ShapeDtypeStruct((T * B, O), jnp.float32),
            jax.ShapeDtypeStruct((L, B, H), jnp.float32),
            jax.ShapeDtypeStruct((L, B, H), jnp.float32),
        ),
        in_specs=[vmem_spec() for _ in range(11)],
        out_specs=(vmem_spec(), vmem_spec(), vmem_spec()),
        scratch_shapes=[pltpu.VMEM((T * B, H), jnp.float32)],
    )(x_tm,
      hidden.astype(jnp.float32), cell.astype(jnp.float32),
      wih0, whh0, b0, wih1, whh1, b1, wfc, bfc)

    # Back to batch-first (B, T, O) — layout plumbing only.
    pred = jnp.transpose(pred_tm.reshape(T, B, O), (1, 0, 2))
    return pred, h_out, c_out


def decoder_reference(rain_forecast, hidden, cell, params):
    """Pure-JAX reference of the same forward pass (for verification)."""
    def cell_fn(x, h, c, w_ih, w_hh, b_ih, b_hh):
        g = x @ w_ih.T + h @ w_hh.T + b_ih + b_hh
        i_, f_, gg, o_ = jnp.split(g, 4, axis=-1)
        c2 = jax.nn.sigmoid(f_) * c + jax.nn.sigmoid(i_) * jnp.tanh(gg)
        h2 = jax.nn.sigmoid(o_) * jnp.tanh(c2)
        return h2, c2

    def step(carry, x_t):
        h0, c0, h1, c1 = carry
        h0, c0 = cell_fn(x_t, h0, c0, params["w_ih_l0"], params["w_hh_l0"],
                         params["b_ih_l0"], params["b_hh_l0"])
        h1, c1 = cell_fn(h0, h1, c1, params["w_ih_l1"], params["w_hh_l1"],
                         params["b_ih_l1"], params["b_hh_l1"])
        return (h0, c0, h1, c1), h1

    carry0 = (hidden[0], cell[0], hidden[1], cell[1])
    carry, ys = jax.lax.scan(step, carry0, jnp.transpose(rain_forecast, (1, 0, 2)))
    out = jnp.transpose(ys, (1, 0, 2))
    pred = out @ params["w_fc"].T + params["b_fc"]
    h_out = jnp.stack([carry[0], carry[2]])
    c_out = jnp.stack([carry[1], carry[3]])
    return pred, h_out, c_out


def init_params(key, rain_forecast_size, hidden_size, output_size):
    """Deterministic synthetic init (PyTorch-style uniform(-1/sqrt(H), 1/sqrt(H)))."""
    H, I, O = hidden_size, rain_forecast_size, output_size
    k = 1.0 / jnp.sqrt(jnp.float32(H))
    keys = jax.random.split(key, 10)
    u = lambda kk, shape: jax.random.uniform(kk, shape, jnp.float32, -k, k)
    return {
        "w_ih_l0": u(keys[0], (4 * H, I)),
        "w_hh_l0": u(keys[1], (4 * H, H)),
        "b_ih_l0": u(keys[2], (4 * H,)),
        "b_hh_l0": u(keys[3], (4 * H,)),
        "w_ih_l1": u(keys[4], (4 * H, H)),
        "w_hh_l1": u(keys[5], (4 * H, H)),
        "b_ih_l1": u(keys[6], (4 * H,)),
        "b_hh_l1": u(keys[7], (4 * H,)),
        "w_fc":    u(keys[8], (O, H)),
        "b_fc":    u(keys[9], (O,)),
    }


if __name__ == "__main__":
    # Small shapes consistent with the module.
    B, T = 2, 8
    rain_forecast_size = 4
    hidden_size = 32
    output_size = 4
    num_layers = 2

    key = jax.random.PRNGKey(0)
    k_p, k_x, k_r, k_h, k_c = jax.random.split(key, 5)

    params = init_params(k_p, rain_forecast_size, hidden_size, output_size)

    x = jax.random.normal(k_x, (B, T, output_size), jnp.float32)          # unused by forward
    rain_forecast = jax.random.normal(k_r, (B, T, rain_forecast_size), jnp.float32)
    hidden = jax.random.normal(k_h, (num_layers, B, hidden_size), jnp.float32)
    cell = jax.random.normal(k_c, (num_layers, B, hidden_size), jnp.float32)

    pred, h_out, c_out = decoder_forward(x, rain_forecast, hidden, cell, params)
    jax.block_until_ready((pred, h_out, c_out))

    pred_r, h_r, c_r = decoder_reference(rain_forecast, hidden, cell, params)
    assert pred.shape == (B, T, output_size)
    assert h_out.shape == (num_layers, B, hidden_size)
    assert c_out.shape == (num_layers, B, hidden_size)
    assert jnp.allclose(pred, pred_r, atol=1e-5, rtol=1e-5)
    assert jnp.allclose(h_out, h_r, atol=1e-5, rtol=1e-5)
    assert jnp.allclose(c_out, c_r, atol=1e-5, rtol=1e-5)

    print("KERNEL_OK")
</pallas_src>

<mosaic_0001>
module attributes {stable_mosaic.version = 11 : i64} {
  func.func @decoder_kernel(%arg0: memref<16x4xf32, #tpu.memory_space<vmem>>, %arg1: memref<2x2x32xf32, #tpu.memory_space<vmem>>, %arg2: memref<2x2x32xf32, #tpu.memory_space<vmem>>, %arg3: memref<4x128xf32, #tpu.memory_space<vmem>>, %arg4: memref<32x128xf32, #tpu.memory_space<vmem>>, %arg5: memref<1x128xf32, #tpu.memory_space<vmem>>, %arg6: memref<32x128xf32, #tpu.memory_space<vmem>>, %arg7: memref<32x128xf32, #tpu.memory_space<vmem>>, %arg8: memref<1x128xf32, #tpu.memory_space<vmem>>, %arg9: memref<32x4xf32, #tpu.memory_space<vmem>>, %arg10: memref<1x4xf32, #tpu.memory_space<vmem>>, %arg11: memref<16x4xf32, #tpu.memory_space<vmem>>, %arg12: memref<2x2x32xf32, #tpu.memory_space<vmem>>, %arg13: memref<2x2x32xf32, #tpu.memory_space<vmem>>, %arg14: memref<16x32xf32, #tpu.memory_space<vmem>>) attributes {dimension_semantics = [], scalar_prefetch = 0 : i64, scratch_operands = 1 : i64, tpu.core_type = #tpu.core_type<tc>} {
    %c0 = arith.constant 0 : index
    %c0_0 = arith.constant 0 : index
    %0 = vector.load %arg4[%c0, %c0_0] : memref<32x128xf32, #tpu.memory_space<vmem>>, vector<32x128xf32>
    %c0_1 = arith.constant 0 : index
    %c0_2 = arith.constant 0 : index
    %1 = vector.load %arg6[%c0_1, %c0_2] : memref<32x128xf32, #tpu.memory_space<vmem>>, vector<32x128xf32>
    %c0_3 = arith.constant 0 : index
    %c0_4 = arith.constant 0 : index
    %2 = vector.load %arg7[%c0_3, %c0_4] : memref<32x128xf32, #tpu.memory_space<vmem>>, vector<32x128xf32>
    %c0_5 = arith.constant 0 : index
    %c0_6 = arith.constant 0 : index
    %3 = vector.load %arg0[%c0_5, %c0_6] : memref<16x4xf32, #tpu.memory_space<vmem>>, vector<16x4xf32>
    %c0_7 = arith.constant 0 : index
    %c0_8 = arith.constant 0 : index
    %4 = vector.load %arg3[%c0_7, %c0_8] : memref<4x128xf32, #tpu.memory_space<vmem>>, vector<4x128xf32>
    %cst = arith.constant dense<0.000000e+00> : vector<16x128xf32>
    %5 = tpu.matmul %3, %4, %cst {dimension_numbers = #tpu.dot_dimension_numbers<[1], [0], [0], [1], [0, 0, 1, 1], [], []>} : vector<16x4xf32>, vector<4x128xf32>, vector<16x128xf32> -> vector<16x128xf32>
    %c0_9 = arith.constant 0 : index
    %c0_10 = arith.constant 0 : index
    %6 = vector.load %arg5[%c0_9, %c0_10] : memref<1x128xf32, #tpu.memory_space<vmem>>, vector<1x128xf32>
    %7 = vector.broadcast %6 : vector<1x128xf32> to vector<16x128xf32>
    %8 = arith.addf %5, %7 : vector<16x128xf32>
    %c0_11 = arith.constant 0 : index
    %c0_12 = arith.constant 0 : index
    %9 = vector.load %arg8[%c0_11, %c0_12] : memref<1x128xf32, #tpu.memory_space<vmem>>, vector<1x128xf32>
    %10 = vector.shape_cast %9 : vector<1x128xf32> to vector<1x128xf32>
    %11 = vector.broadcast %10 : vector<1x128xf32> to vector<2x128xf32>
    %c0_13 = arith.constant 0 : index
    %c0_14 = arith.constant 0 : index
    %c0_15 = arith.constant 0 : index
    %12 = vector.load %arg1[%c0_13, %c0_14, %c0_15] : memref<2x2x32xf32, #tpu.memory_space<vmem>>, vector<1x2x32xf32>
    %13 = vector.shape_cast %12 : vector<1x2x32xf32> to vector<2x32xf32>
    %c0_16 = arith.constant 0 : index
    %c0_17 = arith.constant 0 : index
    %c0_18 = arith.constant 0 : index
    %14 = vector.load %arg2[%c0_16, %c0_17, %c0_18] : memref<2x2x32xf32, #tpu.memory_space<vmem>>, vector<1x2x32xf32>
    %15 = vector.shape_cast %14 : vector<1x2x32xf32> to vector<2x32xf32>
    %c1 = arith.constant 1 : index
    %c0_19 = arith.constant 0 : index
    %c0_20 = arith.constant 0 : index
    %16 = vector.load %arg1[%c1, %c0_19, %c0_20] : memref<2x2x32xf32, #tpu.memory_space<vmem>>, vector<1x2x32xf32>
    %17 = vector.shape_cast %16 : vector<1x2x32xf32> to vector<2x32xf32>
    %c1_21 = arith.constant 1 : index
    %c0_22 = arith.constant 0 : index
    %c0_23 = arith.constant 0 : index
    %18 = vector.load %arg2[%c1_21, %c0_22, %c0_23] : memref<2x2x32xf32, #tpu.memory_space<vmem>>, vector<1x2x32xf32>
    %19 = vector.shape_cast %18 : vector<1x2x32xf32> to vector<2x32xf32>
    %cst_24 = arith.constant dense<0.000000e+00> : vector<2x128xf32>
    %20 = tpu.matmul %13, %0, %cst_24 {dimension_numbers = #tpu.dot_dimension_numbers<[1], [0], [0], [1], [0, 0, 1, 1], [], []>} : vector<2x32xf32>, vector<32x128xf32>, vector<2x128xf32> -> vector<2x128xf32>
    %21 = vector.extract_strided_slice %8 {offsets = [0, 0], sizes = [2, 128], strides = [1, 1]} : vector<16x128xf32> to vector<2x128xf32>
    %22 = arith.addf %20, %21 : vector<2x128xf32>
    %23 = vector.extract_strided_slice %22 {offsets = [0, 0], sizes = [2, 96], strides = [1, 1]} : vector<2x128xf32> to vector<2x96xf32>
    %24 = arith.negf %23 : vector<2x96xf32>
    %25 = math.exp %24 : vector<2x96xf32>
    %cst_25 = arith.constant 1.000000e+00 : f32
    %26 = vector.broadcast %cst_25 : f32 to vector<2x96xf32>
    %27 = arith.addf %26, %25 : vector<2x96xf32>
    %28 = arith.divf %26, %27 : vector<2x96xf32>
    %29 = vector.extract_strided_slice %22 {offsets = [0, 96], sizes = [2, 32], strides = [1, 1]} : vector<2x128xf32> to vector<2x32xf32>
    %30 = math.tanh %29 : vector<2x32xf32>
    %31 = vector.extract_strided_slice %28 {offsets = [0, 0], sizes = [2, 32], strides = [1, 1]} : vector<2x96xf32> to vector<2x32xf32>
    %32 = vector.extract_strided_slice %28 {offsets = [0, 32], sizes = [2, 32], strides = [1, 1]} : vector<2x96xf32> to vector<2x32xf32>
    %33 = vector.extract_strided_slice %28 {offsets = [0, 64], sizes = [2, 32], strides = [1, 1]} : vector<2x96xf32> to vector<2x32xf32>
    %34 = arith.mulf %32, %15 : vector<2x32xf32>
    %35 = arith.mulf %31, %30 : vector<2x32xf32>
    %36 = arith.addf %34, %35 : vector<2x32xf32>
    %37 = math.tanh %36 : vector<2x32xf32>
    %38 = arith.mulf %33, %37 : vector<2x32xf32>
    %cst_26 = arith.constant dense<0.000000e+00> : vector<2x128xf32>
    %39 = tpu.matmul %38, %1, %cst_26 {dimension_numbers = #tpu.dot_dimension_numbers<[1], [0], [0], [1], [0, 0, 1, 1], [], []>} : vector<2x32xf32>, vector<32x128xf32>, vector<2x128xf32> -> vector<2x128xf32>
    %cst_27 = arith.constant dense<0.000000e+00> : vector<2x128xf32>
    %40 = tpu.matmul %17, %2, %cst_27 {dimension_numbers = #tpu.dot_dimension_numbers<[1], [0], [0], [1], [0, 0, 1, 1], [], []>} : vector<2x32xf32>, vector<32x128xf32>, vector<2x128xf32> -> vector<2x128xf32>
    %41 = arith.addf %39, %40 : vector<2x128xf32>
    %42 = arith.addf %41, %11 : vector<2x128xf32>
    %43 = vector.extract_strided_slice %42 {offsets = [0, 0], sizes = [2, 96], strides = [1, 1]} : vector<2x128xf32> to vector<2x96xf32>
    %44 = arith.negf %43 : vector<2x96xf32>
    %45 = math.exp %44 : vector<2x96xf32>
    %cst_28 = arith.constant 1.000000e+00 : f32
    %46 = vector.broadcast %cst_28 : f32 to vector<2x96xf32>
    %47 = arith.addf %46, %45 : vector<2x96xf32>
    %48 = arith.divf %46, %47 : vector<2x96xf32>
    %49 = vector.extract_strided_slice %42 {offsets = [0, 96], sizes = [2, 32], strides = [1, 1]} : vector<2x128xf32> to vector<2x32xf32>
    %50 = math.tanh %49 : vector<2x32xf32>
    %51 = vector.extract_strided_slice %48 {offsets = [0, 0], sizes = [2, 32], strides = [1, 1]} : vector<2x96xf32> to vector<2x32xf32>
    %52 = vector.extract_strided_slice %48 {offsets = [0, 32], sizes = [2, 32], strides = [1, 1]} : vector<2x96xf32> to vector<2x32xf32>
    %53 = vector.extract_strided_slice %48 {offsets = [0, 64], sizes = [2, 32], strides = [1, 1]} : vector<2x96xf32> to vector<2x32xf32>
    %54 = arith.mulf %52, %19 : vector<2x32xf32>
    %55 = arith.mulf %51, %50 : vector<2x32xf32>
    %56 = arith.addf %54, %55 : vector<2x32xf32>
    %57 = math.tanh %56 : vector<2x32xf32>
    %58 = arith.mulf %53, %57 : vector<2x32xf32>
    %c0_29 = arith.constant 0 : index
    %c0_30 = arith.constant 0 : index
    %59 = vector.load %arg14[%c0_29, %c0_30] : memref<16x32xf32, #tpu.memory_space<vmem>>, vector<2x32xf32>
    tpu.vector_store %arg14[%c0_29, %c0_30], %58 {strides = array<i32>} : memref<16x32xf32, #tpu.memory_space<vmem>>, vector<2x32xf32>,
    %cst_31 = arith.constant dense<0.000000e+00> : vector<2x128xf32>
    %60 = tpu.matmul %38, %0, %cst_31 {dimension_numbers = #tpu.dot_dimension_numbers<[1], [0], [0], [1], [0, 0, 1, 1], [], []>} : vector<2x32xf32>, vector<32x128xf32>, vector<2x128xf32> -> vector<2x128xf32>
    %61 = vector.extract_strided_slice %8 {offsets = [2, 0], sizes = [2, 128], strides = [1, 1]} : vector<16x128xf32> to vector<2x128xf32>
    %62 = arith.addf %60, %61 : vector<2x128xf32>
    %63 = vector.extract_strided_slice %62 {offsets = [0, 0], sizes = [2, 96], strides = [1, 1]} : vector<2x128xf32> to vector<2x96xf32>
    %64 = arith.negf %63 : vector<2x96xf32>
    %65 = math.exp %64 : vector<2x96xf32>
    %cst_32 = arith.constant 1.000000e+00 : f32
    %66 = vector.broadcast %cst_32 : f32 to vector<2x96xf32>
    %67 = arith.addf %66, %65 : vector<2x96xf32>
    %68 = arith.divf %66, %67 : vector<2x96xf32>
    %69 = vector.extract_strided_slice %62 {offsets = [0, 96], sizes = [2, 32], strides = [1, 1]} : vector<2x128xf32> to vector<2x32xf32>
    %70 = math.tanh %69 : vector<2x32xf32>
    %71 = vector.extract_strided_slice %68 {offsets = [0, 0], sizes = [2, 32], strides = [1, 1]} : vector<2x96xf32> to vector<2x32xf32>
    %72 = vector.extract_strided_slice %68 {offsets = [0, 32], sizes = [2, 32], strides = [1, 1]} : vector<2x96xf32> to vector<2x32xf32>
    %73 = vector.extract_strided_slice %68 {offsets = [0, 64], sizes = [2, 32], strides = [1, 1]} : vector<2x96xf32> to vector<2x32xf32>
    %74 = arith.mulf %72, %36 : vector<2x32xf32>
    %75 = arith.mulf %71, %70 : vector<2x32xf32>
    %76 = arith.addf %74, %75 : vector<2x32xf32>
    %77 = math.tanh %76 : vector<2x32xf32>
    %78 = arith.mulf %73, %77 : vector<2x32xf32>
    %cst_33 = arith.constant dense<0.000000e+00> : vector<2x128xf32>
    %79 = tpu.matmul %78, %1, %cst_33 {dimension_numbers = #tpu.dot_dimension_numbers<[1], [0], [0], [1], [0, 0, 1, 1], [], []>} : vector<2x32xf32>, vector<32x128xf32>, vector<2x128xf32> -> vector<2x128xf32>
    %cst_34 = arith.constant dense<0.000000e+00> : vector<2x128xf32>
    %80 = tpu.matmul %58, %2, %cst_34 {dimension_numbers = #tpu.dot_dimension_numbers<[1], [0], [0], [1], [0, 0, 1, 1], [], []>} : vector<2x32xf32>, vector<32x128xf32>, vector<2x128xf32> -> vector<2x128xf32>
    %81 = arith.addf %79, %80 : vector<2x128xf32>
    %82 = arith.addf %81, %11 : vector<2x128xf32>
    %83 = vector.extract_strided_slice %82 {offsets = [0, 0], sizes = [2, 96], strides = [1, 1]} : vector<2x128xf32> to vector<2x96xf32>
    %84 = arith.negf %83 : vector<2x96xf32>
    %85 = math.exp %84 : vector<2x96xf32>
    %cst_35 = arith.constant 1.000000e+00 : f32
    %86 = vector.broadcast %cst_35 : f32 to vector<2x96xf32>
    %87 = arith.addf %86, %85 : vector<2x96xf32>
    %88 = arith.divf %86, %87 : vector<2x96xf32>
    %89 = vector.extract_strided_slice %82 {offsets = [0, 96], sizes = [2, 32], strides = [1, 1]} : vector<2x128xf32> to vector<2x32xf32>
    %90 = math.tanh %89 : vector<2x32xf32>
    %91 = vector.extract_strided_slice %88 {offsets = [0, 0], sizes = [2, 32], strides = [1, 1]} : vector<2x96xf32> to vector<2x32xf32>
    %92 = vector.extract_strided_slice %88 {offsets = [0, 32], sizes = [2, 32], strides = [1, 1]} : vector<2x96xf32> to vector<2x32xf32>
    %93 = vector.extract_strided_slice %88 {offsets = [0, 64], sizes = [2, 32], strides = [1, 1]} : vector<2x96xf32> to vector<2x32xf32>
    %94 = arith.mulf %92, %56 : vector<2x32xf32>
    %95 = arith.mulf %91, %90 : vector<2x32xf32>
    %96 = arith.addf %94, %95 : vector<2x32xf32>
    %97 = math.tanh %96 : vector<2x32xf32>
    %98 = arith.mulf %93, %97 : vector<2x32xf32>
    %c2 = arith.constant 2 : index
    %c0_36 = arith.constant 0 : index
    %99 = vector.load %arg14[%c2, %c0_36] : memref<16x32xf32, #tpu.memory_space<vmem>>, vector<2x32xf32>
    tpu.vector_store %arg14[%c2, %c0_36], %98 {strides = array<i32>} : memref<16x32xf32, #tpu.memory_space<vmem>>, vector<2x32xf32>,
    %cst_37 = arith.constant dense<0.000000e+00> : vector<2x128xf32>
    %100 = tpu.matmul %78, %0, %cst_37 {dimension_numbers = #tpu.dot_dimension_numbers<[1], [0], [0], [1], [0, 0, 1, 1], [], []>} : vector<2x32xf32>, vector<32x128xf32>, vector<2x128xf32> -> vector<2x128xf32>
    %101 = vector.extract_strided_slice %8 {offsets = [4, 0], sizes = [2, 128], strides = [1, 1]} : vector<16x128xf32> to vector<2x128xf32>
    %102 = arith.addf %100, %101 : vector<2x128xf32>
    %103 = vector.extract_strided_slice %102 {offsets = [0, 0], sizes = [2, 96], strides = [1, 1]} : vector<2x128xf32> to vector<2x96xf32>
    %104 = arith.negf %103 : vector<2x96xf32>
    %105 = math.exp %104 : vector<2x96xf32>
    %cst_38 = arith.constant 1.000000e+00 : f32
    %106 = vector.broadcast %cst_38 : f32 to vector<2x96xf32>
    %107 = arith.addf %106, %105 : vector<2x96xf32>
    %108 = arith.divf %106, %107 : vector<2x96xf32>
    %109 = vector.extract_strided_slice %102 {offsets = [0, 96], sizes = [2, 32], strides = [1, 1]} : vector<2x128xf32> to vector<2x32xf32>
    %110 = math.tanh %109 : vector<2x32xf32>
    %111 = vector.extract_strided_slice %108 {offsets = [0, 0], sizes = [2, 32], strides = [1, 1]} : vector<2x96xf32> to vector<2x32xf32>
    %112 = vector.extract_strided_slice %108 {offsets = [0, 32], sizes = [2, 32], strides = [1, 1]} : vector<2x96xf32> to vector<2x32xf32>
    %113 = vector.extract_strided_slice %108 {offsets = [0, 64], sizes = [2, 32], strides = [1, 1]} : vector<2x96xf32> to vector<2x32xf32>
    %114 = arith.mulf %112, %76 : vector<2x32xf32>
    %115 = arith.mulf %111, %110 : vector<2x32xf32>
    %116 = arith.addf %114, %115 : vector<2x32xf32>
    %117 = math.tanh %116 : vector<2x32xf32>
    %118 = arith.mulf %113, %117 : vector<2x32xf32>
    %cst_39 = arith.constant dense<0.000000e+00> : vector<2x128xf32>
    %119 = tpu.matmul %118, %1, %cst_39 {dimension_numbers = #tpu.dot_dimension_numbers<[1], [0], [0], [1], [0, 0, 1, 1], [], []>} : vector<2x32xf32>, vector<32x128xf32>, vector<2x128xf32> -> vector<2x128xf32>
    %cst_40 = arith.constant dense<0.000000e+00> : vector<2x128xf32>
    %120 = tpu.matmul %98, %2, %cst_40 {dimension_numbers = #tpu.dot_dimension_numbers<[1], [0], [0], [1], [0, 0, 1, 1], [], []>} : vector<2x32xf32>, vector<32x128xf32>, vector<2x128xf32> -> vector<2x128xf32>
    %121 = arith.addf %119, %120 : vector<2x128xf32>
    %122 = arith.addf %121, %11 : vector<2x128xf32>
    %123 = vector.extract_strided_slice %122 {offsets = [0, 0], sizes = [2, 96], strides = [1, 1]} : vector<2x128xf32> to vector<2x96xf32>
    %124 = arith.negf %123 : vector<2x96xf32>
    %125 = math.exp %124 : vector<2x96xf32>
    %cst_41 = arith.constant 1.000000e+00 : f32
    %126 = vector.broadcast %cst_41 : f32 to vector<2x96xf32>
    %127 = arith.addf %126, %125 : vector<2x96xf32>
    %128 = arith.divf %126, %127 : vector<2x96xf32>
    %129 = vector.extract_strided_slice %122 {offsets = [0, 96], sizes = [2, 32], strides = [1, 1]} : vector<2x128xf32> to vector<2x32xf32>
    %130 = math.tanh %129 : vector<2x32xf32>
    %131 = vector.extract_strided_slice %128 {offsets = [0, 0], sizes = [2, 32], strides = [1, 1]} : vector<2x96xf32> to vector<2x32xf32>
    %132 = vector.extract_strided_slice %128 {offsets = [0, 32], sizes = [2, 32], strides = [1, 1]} : vector<2x96xf32> to vector<2x32xf32>
    %133 = vector.extract_strided_slice %128 {offsets = [0, 64], sizes = [2, 32], strides = [1, 1]} : vector<2x96xf32> to vector<2x32xf32>
    %134 = arith.mulf %132, %96 : vector<2x32xf32>
    %135 = arith.mulf %131, %130 : vector<2x32xf32>
    %136 = arith.addf %134, %135 : vector<2x32xf32>
    %137 = math.tanh %136 : vector<2x32xf32>
    %138 = arith.mulf %133, %137 : vector<2x32xf32>
    %c4 = arith.constant 4 : index
    %c0_42 = arith.constant 0 : index
    %139 = vector.load %arg14[%c4, %c0_42] : memref<16x32xf32, #tpu.memory_space<vmem>>, vector<2x32xf32>
    tpu.vector_store %arg14[%c4, %c0_42], %138 {strides = array<i32>} : memref<16x32xf32, #tpu.memory_space<vmem>>, vector<2x32xf32>,
    %cst_43 = arith.constant dense<0.000000e+00> : vector<2x128xf32>
    %140 = tpu.matmul %118, %0, %cst_43 {dimension_numbers = #tpu.dot_dimension_numbers<[1], [0], [0], [1], [0, 0, 1, 1], [], []>} : vector<2x32xf32>, vector<32x128xf32>, vector<2x128xf32> -> vector<2x128xf32>
    %141 = vector.extract_strided_slice %8 {offsets = [6, 0], sizes = [2, 128], strides = [1, 1]} : vector<16x128xf32> to vector<2x128xf32>
    %142 = arith.addf %140, %141 : vector<2x128xf32>
    %143 = vector.extract_strided_slice %142 {offsets = [0, 0], sizes = [2, 96], strides = [1, 1]} : vector<2x128xf32> to vector<2x96xf32>
    %144 = arith.negf %143 : vector<2x96xf32>
    %145 = math.exp %144 : vector<2x96xf32>
    %cst_44 = arith.constant 1.000000e+00 : f32
    %146 = vector.broadcast %cst_44 : f32 to vector<2x96xf32>
    %147 = arith.addf %146, %145 : vector<2x96xf32>
    %148 = arith.divf %146, %147 : vector<2x96xf32>
    %149 = vector.extract_strided_slice %142 {offsets = [0, 96], sizes = [2, 32], strides = [1, 1]} : vector<2x128xf32> to vector<2x32xf32>
    %150 = math.tanh %149 : vector<2x32xf32>
    %151 = vector.extract_strided_slice %148 {offsets = [0, 0], sizes = [2, 32], strides = [1, 1]} : vector<2x96xf32> to vector<2x32xf32>
    %152 = vector.extract_strided_slice %148 {offsets = [0, 32], sizes = [2, 32], strides = [1, 1]} : vector<2x96xf32> to vector<2x32xf32>
    %153 = vector.extract_strided_slice %148 {offsets = [0, 64], sizes = [2, 32], strides = [1, 1]} : vector<2x96xf32> to vector<2x32xf32>
    %154 = arith.mulf %152, %116 : vector<2x32xf32>
    %155 = arith.mulf %151, %150 : vector<2x32xf32>
    %156 = arith.addf %154, %155 : vector<2x32xf32>
    %157 = math.tanh %156 : vector<2x32xf32>
    %158 = arith.mulf %153, %157 : vector<2x32xf32>
    %cst_45 = arith.constant dense<0.000000e+00> : vector<2x128xf32>
    %159 = tpu.matmul %158, %1, %cst_45 {dimension_numbers = #tpu.dot_dimension_numbers<[1], [0], [0], [1], [0, 0, 1, 1], [], []>} : vector<2x32xf32>, vector<32x128xf32>, vector<2x128xf32> -> vector<2x128xf32>
    %cst_46 = arith.constant dense<0.000000e+00> : vector<2x128xf32>
    %160 = tpu.matmul %138, %2, %cst_46 {dimension_numbers = #tpu.dot_dimension_numbers<[1], [0], [0], [1], [0, 0, 1, 1], [], []>} : vector<2x32xf32>, vector<32x128xf32>, vector<2x128xf32> -> vector<2x128xf32>
    %161 = arith.addf %159, %160 : vector<2x128xf32>
    %162 = arith.addf %161, %11 : vector<2x128xf32>
    %163 = vector.extract_strided_slice %162 {offsets = [0, 0], sizes = [2, 96], strides = [1, 1]} : vector<2x128xf32> to vector<2x96xf32>
    %164 = arith.negf %163 : vector<2x96xf32>
    %165 = math.exp %164 : vector<2x96xf32>
    %cst_47 = arith.constant 1.000000e+00 : f32
    %166 = vector.broadcast %cst_47 : f32 to vector<2x96xf32>
    %167 = arith.addf %166, %165 : vector<2x96xf32>
    %168 = arith.divf %166, %167 : vector<2x96xf32>
    %169 = vector.extract_strided_slice %162 {offsets = [0, 96], sizes = [2, 32], strides = [1, 1]} : vector<2x128xf32> to vector<2x32xf32>
    %170 = math.tanh %169 : vector<2x32xf32>
    %171 = vector.extract_strided_slice %168 {offsets = [0, 0], sizes = [2, 32], strides = [1, 1]} : vector<2x96xf32> to vector<2x32xf32>
    %172 = vector.extract_strided_slice %168 {offsets = [0, 32], sizes = [2, 32], strides = [1, 1]} : vector<2x96xf32> to vector<2x32xf32>
    %173 = vector.extract_strided_slice %168 {offsets = [0, 64], sizes = [2, 32], strides = [1, 1]} : vector<2x96xf32> to vector<2x32xf32>
    %174 = arith.mulf %172, %136 : vector<2x32xf32>
    %175 = arith.mulf %171, %170 : vector<2x32xf32>
    %176 = arith.addf %174, %175 : vector<2x32xf32>
    %177 = math.tanh %176 : vector<2x32xf32>
    %178 = arith.mulf %173, %177 : vector<2x32xf32>
    %c6 = arith.constant 6 : index
    %c0_48 = arith.constant 0 : index
    %179 = vector.load %arg14[%c6, %c0_48] : memref<16x32xf32, #tpu.memory_space<vmem>>, vector<2x32xf32>
    tpu.vector_store %arg14[%c6, %c0_48], %178 {strides = array<i32>} : memref<16x32xf32, #tpu.memory_space<vmem>>, vector<2x32xf32>,
    %cst_49 = arith.constant dense<0.000000e+00> : vector<2x128xf32>
    %180 = tpu.matmul %158, %0, %cst_49 {dimension_numbers = #tpu.dot_dimension_numbers<[1], [0], [0], [1], [0, 0, 1, 1], [], []>} : vector<2x32xf32>, vector<32x128xf32>, vector<2x128xf32> -> vector<2x128xf32>
    %181 = vector.extract_strided_slice %8 {offsets = [8, 0], sizes = [2, 128], strides = [1, 1]} : vector<16x128xf32> to vector<2x128xf32>
    %182 = arith.addf %180, %181 : vector<2x128xf32>
    %183 = vector.extract_strided_slice %182 {offsets = [0, 0], sizes = [2, 96], strides = [1, 1]} : vector<2x128xf32> to vector<2x96xf32>
    %184 = arith.negf %183 : vector<2x96xf32>
    %185 = math.exp %184 : vector<2x96xf32>
    %cst_50 = arith.constant 1.000000e+00 : f32
    %186 = vector.broadcast %cst_50 : f32 to vector<2x96xf32>
    %187 = arith.addf %186, %185 : vector<2x96xf32>
    %188 = arith.divf %186, %187 : vector<2x96xf32>
    %189 = vector.extract_strided_slice %182 {offsets = [0, 96], sizes = [2, 32], strides = [1, 1]} : vector<2x128xf32> to vector<2x32xf32>
    %190 = math.tanh %189 : vector<2x32xf32>
    %191 = vector.extract_strided_slice %188 {offsets = [0, 0], sizes = [2, 32], strides = [1, 1]} : vector<2x96xf32> to vector<2x32xf32>
    %192 = vector.extract_strided_slice %188 {offsets = [0, 32], sizes = [2, 32], strides = [1, 1]} : vector<2x96xf32> to vector<2x32xf32>
    %193 = vector.extract_strided_slice %188 {offsets = [0, 64], sizes = [2, 32], strides = [1, 1]} : vector<2x96xf32> to vector<2x32xf32>
    %194 = arith.mulf %192, %156 : vector<2x32xf32>
    %195 = arith.mulf %191, %190 : vector<2x32xf32>
    %196 = arith.addf %194, %195 : vector<2x32xf32>
    %197 = math.tanh %196 : vector<2x32xf32>
    %198 = arith.mulf %193, %197 : vector<2x32xf32>
    %cst_51 = arith.constant dense<0.000000e+00> : vector<2x128xf32>
    %199 = tpu.matmul %198, %1, %cst_51 {dimension_numbers = #tpu.dot_dimension_numbers<[1], [0], [0], [1], [0, 0, 1, 1], [], []>} : vector<2x32xf32>, vector<32x128xf32>, vector<2x128xf32> -> vector<2x128xf32>
    %cst_52 = arith.constant dense<0.000000e+00> : vector<2x128xf32>
    %200 = tpu.matmul %178, %2, %cst_52 {dimension_numbers = #tpu.dot_dimension_numbers<[1], [0], [0], [1], [0, 0, 1, 1], [], []>} : vector<2x32xf32>, vector<32x128xf32>, vector<2x128xf32> -> vector<2x128xf32>
    %201 = arith.addf %199, %200 : vector<2x128xf32>
    %202 = arith.addf %201, %11 : vector<2x128xf32>
    %203 = vector.extract_strided_slice %202 {offsets = [0, 0], sizes = [2, 96], strides = [1, 1]} : vector<2x128xf32> to vector<2x96xf32>
    %204 = arith.negf %203 : vector<2x96xf32>
    %205 = math.exp %204 : vector<2x96xf32>
    %cst_53 = arith.constant 1.000000e+00 : f32
    %206 = vector.broadcast %cst_53 : f32 to vector<2x96xf32>
    %207 = arith.addf %206, %205 : vector<2x96xf32>
    %208 = arith.divf %206, %207 : vector<2x96xf32>
    %209 = vector.extract_strided_slice %202 {offsets = [0, 96], sizes = [2, 32], strides = [1, 1]} : vector<2x128xf32> to vector<2x32xf32>
    %210 = math.tanh %209 : vector<2x32xf32>
    %211 = vector.extract_strided_slice %208 {offsets = [0, 0], sizes = [2, 32], strides = [1, 1]} : vector<2x96xf32> to vector<2x32xf32>
    %212 = vector.extract_strided_slice %208 {offsets = [0, 32], sizes = [2, 32], strides = [1, 1]} : vector<2x96xf32> to vector<2x32xf32>
    %213 = vector.extract_strided_slice %208 {offsets = [0, 64], sizes = [2, 32], strides = [1, 1]} : vector<2x96xf32> to vector<2x32xf32>
    %214 = arith.mulf %212, %176 : vector<2x32xf32>
    %215 = arith.mulf %211, %210 : vector<2x32xf32>
    %216 = arith.addf %214, %215 : vector<2x32xf32>
    %217 = math.tanh %216 : vector<2x32xf32>
    %218 = arith.mulf %213, %217 : vector<2x32xf32>
    %c8 = arith.constant 8 : index
    %c0_54 = arith.constant 0 : index
    %219 = vector.load %arg14[%c8, %c0_54] : memref<16x32xf32, #tpu.memory_space<vmem>>, vector<2x32xf32>
    tpu.vector_store %arg14[%c8, %c0_54], %218 {strides = array<i32>} : memref<16x32xf32, #tpu.memory_space<vmem>>, vector<2x32xf32>,
    %cst_55 = arith.constant dense<0.000000e+00> : vector<2x128xf32>
    %220 = tpu.matmul %198, %0, %cst_55 {dimension_numbers = #tpu.dot_dimension_numbers<[1], [0], [0], [1], [0, 0, 1, 1], [], []>} : vector<2x32xf32>, vector<32x128xf32>, vector<2x128xf32> -> vector<2x128xf32>
    %221 = vector.extract_strided_slice %8 {offsets = [10, 0], sizes = [2, 128], strides = [1, 1]} : vector<16x128xf32> to vector<2x128xf32>
    %222 = arith.addf %220, %221 : vector<2x128xf32>
    %223 = vector.extract_strided_slice %222 {offsets = [0, 0], sizes = [2, 96], strides = [1, 1]} : vector<2x128xf32> to vector<2x96xf32>
    %224 = arith.negf %223 : vector<2x96xf32>
    %225 = math.exp %224 : vector<2x96xf32>
    %cst_56 = arith.constant 1.000000e+00 : f32
    %226 = vector.broadcast %cst_56 : f32 to vector<2x96xf32>
    %227 = arith.addf %226, %225 : vector<2x96xf32>
    %228 = arith.divf %226, %227 : vector<2x96xf32>
    %229 = vector.extract_strided_slice %222 {offsets = [0, 96], sizes = [2, 32], strides = [1, 1]} : vector<2x128xf32> to vector<2x32xf32>
    %230 = math.tanh %229 : vector<2x32xf32>
    %231 = vector.extract_strided_slice %228 {offsets = [0, 0], sizes = [2, 32], strides = [1, 1]} : vector<2x96xf32> to vector<2x32xf32>
    %232 = vector.extract_strided_slice %228 {offsets = [0, 32], sizes = [2, 32], strides = [1, 1]} : vector<2x96xf32> to vector<2x32xf32>
    %233 = vector.extract_strided_slice %228 {offsets = [0, 64], sizes = [2, 32], strides = [1, 1]} : vector<2x96xf32> to vector<2x32xf32>
    %234 = arith.mulf %232, %196 : vector<2x32xf32>
    %235 = arith.mulf %231, %230 : vector<2x32xf32>
    %236 = arith.addf %234, %235 : vector<2x32xf32>
    %237 = math.tanh %236 : vector<2x32xf32>
    %238 = arith.mulf %233, %237 : vector<2x32xf32>
    %cst_57 = arith.constant dense<0.000000e+00> : vector<2x128xf32>
    %239 = tpu.matmul %238, %1, %cst_57 {dimension_numbers = #tpu.dot_dimension_numbers<[1], [0], [0], [1], [0, 0, 1, 1], [], []>} : vector<2x32xf32>, vector<32x128xf32>, vector<2x128xf32> -> vector<2x128xf32>
    %cst_58 = arith.constant dense<0.000000e+00> : vector<2x128xf32>
    %240 = tpu.matmul %218, %2, %cst_58 {dimension_numbers = #tpu.dot_dimension_numbers<[1], [0], [0], [1], [0, 0, 1, 1], [], []>} : vector<2x32xf32>, vector<32x128xf32>, vector<2x128xf32> -> vector<2x128xf32>
    %241 = arith.addf %239, %240 : vector<2x128xf32>
    %242 = arith.addf %241, %11 : vector<2x128xf32>
    %243 = vector.extract_strided_slice %242 {offsets = [0, 0], sizes = [2, 96], strides = [1, 1]} : vector<2x128xf32> to vector<2x96xf32>
    %244 = arith.negf %243 : vector<2x96xf32>
    %245 = math.exp %244 : vector<2x96xf32>
    %cst_59 = arith.constant 1.000000e+00 : f32
    %246 = vector.broadcast %cst_59 : f32 to vector<2x96xf32>
    %247 = arith.addf %246, %245 : vector<2x96xf32>
    %248 = arith.divf %246, %247 : vector<2x96xf32>
    %249 = vector.extract_strided_slice %242 {offsets = [0, 96], sizes = [2, 32], strides = [1, 1]} : vector<2x128xf32> to vector<2x32xf32>
    %250 = math.tanh %249 : vector<2x32xf32>
    %251 = vector.extract_strided_slice %248 {offsets = [0, 0], sizes = [2, 32], strides = [1, 1]} : vector<2x96xf32> to vector<2x32xf32>
    %252 = vector.extract_strided_slice %248 {offsets = [0, 32], sizes = [2, 32], strides = [1, 1]} : vector<2x96xf32> to vector<2x32xf32>
    %253 = vector.extract_strided_slice %248 {offsets = [0, 64], sizes = [2, 32], strides = [1, 1]} : vector<2x96xf32> to vector<2x32xf32>
    %254 = arith.mulf %252, %216 : vector<2x32xf32>
    %255 = arith.mulf %251, %250 : vector<2x32xf32>
    %256 = arith.addf %254, %255 : vector<2x32xf32>
    %257 = math.tanh %256 : vector<2x32xf32>
    %258 = arith.mulf %253, %257 : vector<2x32xf32>
    %c10 = arith.constant 10 : index
    %c0_60 = arith.constant 0 : index
    %259 = vector.load %arg14[%c10, %c0_60] : memref<16x32xf32, #tpu.memory_space<vmem>>, vector<2x32xf32>
    tpu.vector_store %arg14[%c10, %c0_60], %258 {strides = array<i32>} : memref<16x32xf32, #tpu.memory_space<vmem>>, vector<2x32xf32>,
    %cst_61 = arith.constant dense<0.000000e+00> : vector<2x128xf32>
    %260 = tpu.matmul %238, %0, %cst_61 {dimension_numbers = #tpu.dot_dimension_numbers<[1], [0], [0], [1], [0, 0, 1, 1], [], []>} : vector<2x32xf32>, vector<32x128xf32>, vector<2x128xf32> -> vector<2x128xf32>
    %261 = vector.extract_strided_slice %8 {offsets = [12, 0], sizes = [2, 128], strides = [1, 1]} : vector<16x128xf32> to vector<2x128xf32>
    %262 = arith.addf %260, %261 : vector<2x128xf32>
    %263 = vector.extract_strided_slice %262 {offsets = [0, 0], sizes = [2, 96], strides = [1, 1]} : vector<2x128xf32> to vector<2x96xf32>
    %264 = arith.negf %263 : vector<2x96xf32>
    %265 = math.exp %264 : vector<2x96xf32>
    %cst_62 = arith.constant 1.000000e+00 : f32
    %266 = vector.broadcast %cst_62 : f32 to vector<2x96xf32>
    %267 = arith.addf %266, %265 : vector<2x96xf32>
    %268 = arith.divf %266, %267 : vector<2x96xf32>
    %269 = vector.extract_strided_slice %262 {offsets = [0, 96], sizes = [2, 32], strides = [1, 1]} : vector<2x128xf32> to vector<2x32xf32>
    %270 = math.tanh %269 : vector<2x32xf32>
    %271 = vector.extract_strided_slice %268 {offsets = [0, 0], sizes = [2, 32], strides = [1, 1]} : vector<2x96xf32> to vector<2x32xf32>
    %272 = vector.extract_strided_slice %268 {offsets = [0, 32], sizes = [2, 32], strides = [1, 1]} : vector<2x96xf32> to vector<2x32xf32>
    %273 = vector.extract_strided_slice %268 {offsets = [0, 64], sizes = [2, 32], strides = [1, 1]} : vector<2x96xf32> to vector<2x32xf32>
    %274 = arith.mulf %272, %236 : vector<2x32xf32>
    %275 = arith.mulf %271, %270 : vector<2x32xf32>
    %276 = arith.addf %274, %275 : vector<2x32xf32>
    %277 = math.tanh %276 : vector<2x32xf32>
    %278 = arith.mulf %273, %277 : vector<2x32xf32>
    %cst_63 = arith.constant dense<0.000000e+00> : vector<2x128xf32>
    %279 = tpu.matmul %278, %1, %cst_63 {dimension_numbers = #tpu.dot_dimension_numbers<[1], [0], [0], [1], [0, 0, 1, 1], [], []>} : vector<2x32xf32>, vector<32x128xf32>, vector<2x128xf32> -> vector<2x128xf32>
    %cst_64 = arith.constant dense<0.000000e+00> : vector<2x128xf32>
    %280 = tpu.matmul %258, %2, %cst_64 {dimension_numbers = #tpu.dot_dimension_numbers<[1], [0], [0], [1], [0, 0, 1, 1], [], []>} : vector<2x32xf32>, vector<32x128xf32>, vector<2x128xf32> -> vector<2x128xf32>
    %281 = arith.addf %279, %280 : vector<2x128xf32>
    %282 = arith.addf %281, %11 : vector<2x128xf32>
    %283 = vector.extract_strided_slice %282 {offsets = [0, 0], sizes = [2, 96], strides = [1, 1]} : vector<2x128xf32> to vector<2x96xf32>
    %284 = arith.negf %283 : vector<2x96xf32>
    %285 = math.exp %284 : vector<2x96xf32>
    %cst_65 = arith.constant 1.000000e+00 : f32
    %286 = vector.broadcast %cst_65 : f32 to vector<2x96xf32>
    %287 = arith.addf %286, %285 : vector<2x96xf32>
    %288 = arith.divf %286, %287 : vector<2x96xf32>
    %289 = vector.extract_strided_slice %282 {offsets = [0, 96], sizes = [2, 32], strides = [1, 1]} : vector<2x128xf32> to vector<2x32xf32>
    %290 = math.tanh %289 : vector<2x32xf32>
    %291 = vector.extract_strided_slice %288 {offsets = [0, 0], sizes = [2, 32], strides = [1, 1]} : vector<2x96xf32> to vector<2x32xf32>
    %292 = vector.extract_strided_slice %288 {offsets = [0, 32], sizes = [2, 32], strides = [1, 1]} : vector<2x96xf32> to vector<2x32xf32>
    %293 = vector.extract_strided_slice %288 {offsets = [0, 64], sizes = [2, 32], strides = [1, 1]} : vector<2x96xf32> to vector<2x32xf32>
    %294 = arith.mulf %292, %256 : vector<2x32xf32>
    %295 = arith.mulf %291, %290 : vector<2x32xf32>
    %296 = arith.addf %294, %295 : vector<2x32xf32>
    %297 = math.tanh %296 : vector<2x32xf32>
    %298 = arith.mulf %293, %297 : vector<2x32xf32>
    %c12 = arith.constant 12 : index
    %c0_66 = arith.constant 0 : index
    %299 = vector.load %arg14[%c12, %c0_66] : memref<16x32xf32, #tpu.memory_space<vmem>>, vector<2x32xf32>
    tpu.vector_store %arg14[%c12, %c0_66], %298 {strides = array<i32>} : memref<16x32xf32, #tpu.memory_space<vmem>>, vector<2x32xf32>,
    %cst_67 = arith.constant dense<0.000000e+00> : vector<2x128xf32>
    %300 = tpu.matmul %278, %0, %cst_67 {dimension_numbers = #tpu.dot_dimension_numbers<[1], [0], [0], [1], [0, 0, 1, 1], [], []>} : vector<2x32xf32>, vector<32x128xf32>, vector<2x128xf32> -> vector<2x128xf32>
    %301 = vector.extract_strided_slice %8 {offsets = [14, 0], sizes = [2, 128], strides = [1, 1]} : vector<16x128xf32> to vector<2x128xf32>
    %302 = arith.addf %300, %301 : vector<2x128xf32>
    %303 = vector.extract_strided_slice %302 {offsets = [0, 0], sizes = [2, 96], strides = [1, 1]} : vector<2x128xf32> to vector<2x96xf32>
    %304 = arith.negf %303 : vector<2x96xf32>
    %305 = math.exp %304 : vector<2x96xf32>
    %cst_68 = arith.constant 1.000000e+00 : f32
    %306 = vector.broadcast %cst_68 : f32 to vector<2x96xf32>
    %307 = arith.addf %306, %305 : vector<2x96xf32>
    %308 = arith.divf %306, %307 : vector<2x96xf32>
    %309 = vector.extract_strided_slice %302 {offsets = [0, 96], sizes = [2, 32], strides = [1, 1]} : vector<2x128xf32> to vector<2x32xf32>
    %310 = math.tanh %309 : vector<2x32xf32>
    %311 = vector.extract_strided_slice %308 {offsets = [0, 0], sizes = [2, 32], strides = [1, 1]} : vector<2x96xf32> to vector<2x32xf32>
    %312 = vector.extract_strided_slice %308 {offsets = [0, 32], sizes = [2, 32], strides = [1, 1]} : vector<2x96xf32> to vector<2x32xf32>
    %313 = vector.extract_strided_slice %308 {offsets = [0, 64], sizes = [2, 32], strides = [1, 1]} : vector<2x96xf32> to vector<2x32xf32>
    %314 = arith.mulf %312, %276 : vector<2x32xf32>
    %315 = arith.mulf %311, %310 : vector<2x32xf32>
    %316 = arith.addf %314, %315 : vector<2x32xf32>
    %317 = math.tanh %316 : vector<2x32xf32>
    %318 = arith.mulf %313, %317 : vector<2x32xf32>
    %cst_69 = arith.constant dense<0.000000e+00> : vector<2x128xf32>
    %319 = tpu.matmul %318, %1, %cst_69 {dimension_numbers = #tpu.dot_dimension_numbers<[1], [0], [0], [1], [0, 0, 1, 1], [], []>} : vector<2x32xf32>, vector<32x128xf32>, vector<2x128xf32> -> vector<2x128xf32>
    %cst_70 = arith.constant dense<0.000000e+00> : vector<2x128xf32>
    %320 = tpu.matmul %298, %2, %cst_70 {dimension_numbers = #tpu.dot_dimension_numbers<[1], [0], [0], [1], [0, 0, 1, 1], [], []>} : vector<2x32xf32>, vector<32x128xf32>, vector<2x128xf32> -> vector<2x128xf32>
    %321 = arith.addf %319, %320 : vector<2x128xf32>
    %322 = arith.addf %321, %11 : vector<2x128xf32>
    %323 = vector.extract_strided_slice %322 {offsets = [0, 0], sizes = [2, 96], strides = [1, 1]} : vector<2x128xf32> to vector<2x96xf32>
    %324 = arith.negf %323 : vector<2x96xf32>
    %325 = math.exp %324 : vector<2x96xf32>
    %cst_71 = arith.constant 1.000000e+00 : f32
    %326 = vector.broadcast %cst_71 : f32 to vector<2x96xf32>
    %327 = arith.addf %326, %325 : vector<2x96xf32>
    %328 = arith.divf %326, %327 : vector<2x96xf32>
    %329 = vector.extract_strided_slice %322 {offsets = [0, 96], sizes = [2, 32], strides = [1, 1]} : vector<2x128xf32> to vector<2x32xf32>
    %330 = math.tanh %329 : vector<2x32xf32>
    %331 = vector.extract_strided_slice %328 {offsets = [0, 0], sizes = [2, 32], strides = [1, 1]} : vector<2x96xf32> to vector<2x32xf32>
    %332 = vector.extract_strided_slice %328 {offsets = [0, 32], sizes = [2, 32], strides = [1, 1]} : vector<2x96xf32> to vector<2x32xf32>
    %333 = vector.extract_strided_slice %328 {offsets = [0, 64], sizes = [2, 32], strides = [1, 1]} : vector<2x96xf32> to vector<2x32xf32>
    %334 = arith.mulf %332, %296 : vector<2x32xf32>
    %335 = arith.mulf %331, %330 : vector<2x32xf32>
    %336 = arith.addf %334, %335 : vector<2x32xf32>
    %337 = math.tanh %336 : vector<2x32xf32>
    %338 = arith.mulf %333, %337 : vector<2x32xf32>
    %c14 = arith.constant 14 : index
    %c0_72 = arith.constant 0 : index
    %339 = vector.load %arg14[%c14, %c0_72] : memref<16x32xf32, #tpu.memory_space<vmem>>, vector<2x32xf32>
    tpu.vector_store %arg14[%c14, %c0_72], %338 {strides = array<i32>} : memref<16x32xf32, #tpu.memory_space<vmem>>, vector<2x32xf32>,
    %c0_73 = arith.constant 0 : index
    %c0_74 = arith.constant 0 : index
    %340 = vector.load %arg14[%c0_73, %c0_74] : memref<16x32xf32, #tpu.memory_space<vmem>>, vector<16x32xf32>
    %c0_75 = arith.constant 0 : index
    %c0_76 = arith.constant 0 : index
    %341 = vector.load %arg9[%c0_75, %c0_76] : memref<32x4xf32, #tpu.memory_space<vmem>>, vector<32x4xf32>
    %cst_77 = arith.constant dense<0.000000e+00> : vector<16x4xf32>
    %342 = tpu.matmul %340, %341, %cst_77 {dimension_numbers = #tpu.dot_dimension_numbers<[1], [0], [0], [1], [0, 0, 1, 1], [], []>} : vector<16x32xf32>, vector<32x4xf32>, vector<16x4xf32> -> vector<16x4xf32>
    %c0_78 = arith.constant 0 : index
    %c0_79 = arith.constant 0 : index
    %343 = vector.load %arg10[%c0_78, %c0_79] : memref<1x4xf32, #tpu.memory_space<vmem>>, vector<1x4xf32>
    %344 = vector.broadcast %343 : vector<1x4xf32> to vector<16x4xf32>
    %345 = arith.addf %342, %344 : vector<16x4xf32>
    %c0_80 = arith.constant 0 : index
    %c0_81 = arith.constant 0 : index
    %346 = vector.load %arg11[%c0_80, %c0_81] : memref<16x4xf32, #tpu.memory_space<vmem>>, vector<16x4xf32>
    tpu.vector_store %arg11[%c0_80, %c0_81], %345 {strides = array<i32>} : memref<16x4xf32, #tpu.memory_space<vmem>>, vector<16x4xf32>,
    %c0_82 = arith.constant 0 : index
    %c0_83 = arith.constant 0 : index
    %c0_84 = arith.constant 0 : index
    %347 = vector.load %arg12[%c0_82, %c0_83, %c0_84] : memref<2x2x32xf32, #tpu.memory_space<vmem>>, vector<1x2x32xf32>
    %348 = vector.shape_cast %347 : vector<1x2x32xf32> to vector<2x32xf32>
    %349 = vector.shape_cast %318 : vector<2x32xf32> to vector<1x2x32xf32>
    tpu.vector_store %arg12[%c0_82, %c0_83, %c0_84], %349 {strides = array<i32>} : memref<2x2x32xf32, #tpu.memory_space<vmem>>, vector<1x2x32xf32>,
    %c1_85 = arith.constant 1 : index
    %c0_86 = arith.constant 0 : index
    %c0_87 = arith.constant 0 : index
    %350 = vector.load %arg12[%c1_85, %c0_86, %c0_87] : memref<2x2x32xf32, #tpu.memory_space<vmem>>, vector<1x2x32xf32>
    %351 = vector.shape_cast %350 : vector<1x2x32xf32> to vector<2x32xf32>
    %352 = vector.shape_cast %338 : vector<2x32xf32> to vector<1x2x32xf32>
    tpu.vector_store %arg12[%c1_85, %c0_86, %c0_87], %352 {strides = array<i32>} : memref<2x2x32xf32, #tpu.memory_space<vmem>>, vector<1x2x32xf32>,
    %c0_88 = arith.constant 0 : index
    %c0_89 = arith.constant 0 : index
    %c0_90 = arith.constant 0 : index
    %353 = vector.load %arg13[%c0_88, %c0_89, %c0_90] : memref<2x2x32xf32, #tpu.memory_space<vmem>>, vector<1x2x32xf32>
    %354 = vector.shape_cast %353 : vector<1x2x32xf32> to vector<2x32xf32>
    %355 = vector.shape_cast %316 : vector<2x32xf32> to vector<1x2x32xf32>
    tpu.vector_store %arg13[%c0_88, %c0_89, %c0_90], %355 {strides = array<i32>} : memref<2x2x32xf32, #tpu.memory_space<vmem>>, vector<1x2x32xf32>,
    %c1_91 = arith.constant 1 : index
    %c0_92 = arith.constant 0 : index
    %c0_93 = arith.constant 0 : index
    %356 = vector.load %arg13[%c1_91, %c0_92, %c0_93] : memref<2x2x32xf32, #tpu.memory_space<vmem>>, vector<1x2x32xf32>
    %357 = vector.shape_cast %356 : vector<1x2x32xf32> to vector<2x32xf32>
    %358 = vector.shape_cast %336 : vector<2x32xf32> to vector<1x2x32xf32>
    tpu.vector_store %arg13[%c1_91, %c0_92, %c0_93], %358 {strides = array<i32>} : memref<2x2x32xf32, #tpu.memory_space<vmem>>, vector<1x2x32xf32>,
    return
  }
}

</mosaic_0001>

<bundles_post_ra>
// kernel: decoder_forward.1
= control target key start
LH: loop header
LB: loop body
LE: loop exit
PB: predicated region body
PF: predicated region fallthrough
CT: control target
= control target key end

     0   :  { %19 = vsyncpa [#allocation4], 0  ;;  %vm72_vm0 = vcmask 1043456   ;;  %v3303_v3 = vmov 0.0|0.0   ;;  %vm65_vm1 = vcmask 31744   ;;  %s3832_s0 = inlined_call_operand.vmem [shape: f32[16,4], index: 0, kind: input, shape index: {}]   ;;  %s3833_s1 = inlined_call_operand.vmem [shape: f32[2,2,32], index: 1, kind: input, shape index: {}]   ;;  %s3834_s2 = inlined_call_operand.vmem [shape: f32[2,2,32], index: 2, kind: input, shape index: {}]   ;;  %s3835_s3 = inlined_call_operand.vmem [shape: f32[4,128], index: 3, kind: input, shape index: {}]   ;;  %s3836_s4 = inlined_call_operand.vmem [shape: f32[32,128], index: 4, kind: input, shape index: {}]   ;;  %s3837_s5 = inlined_call_operand.vmem [shape: f32[1,128], index: 5, kind: input, shape index: {}]   ;;  %s3838_s6 = inlined_call_operand.vmem [shape: f32[32,128], index: 6, kind: input, shape index: {}]   ;;  %s3839_s7 = inlined_call_operand.vmem [shape: f32[32,128], index: 7, kind: input, shape index: {}]   ;;  %s3840_s8 = inlined_call_operand.vmem [shape: f32[1,128], index: 8, kind: input, shape index: {}]   ;;  %s3841_s9 = inlined_call_operand.vmem [shape: f32[32,4], index: 9, kind: input, shape index: {}]   ;;  %s3842_s10 = inlined_call_operand.vmem [shape: f32[1,4], index: 10, kind: input, shape index: {}]   ;;  %s3843_s11 = inlined_call_operand.vmem [shape: f32[16,4], index: 11, kind: output, shape index: {0}]   ;;  %s3844_s12 = inlined_call_operand.hbm [shape: f32[2,2,32], index: 12, kind: output, shape index: {1}]   ;;  %s3845_s13 = inlined_call_operand.hbm [shape: f32[2,2,32], index: 13, kind: output, shape index: {2}]  }
   0x1   :  { %v43_v0 = vld [vmem:[%s3836_s4] sm:$0xff]  ;;  %v44_v1 = vld [vmem:[%s3836_s4 + $0x8] sm:$0xff]  ;;  %2966 = vmatprep.subr.bf16.mxu1 %v3303_v3  ;;  %v45_v7 = vld [vmem:[%s3836_s4 + $0x10] sm:$0xff] }
   0x2   :  { %v57_v2 = vld [vmem:[%s3835_s3] sm:$0xf]  ;;  %v3392_v4 = vpack.c.bf16 %v44_v1, %v43_v0  ;;  %v56_v6 = vld [vmem:[%s3832_s0 + $0x8] sm:$0xff]  ;;  %v46_v8 = vld [vmem:[%s3836_s4 + $0x18] sm:$0xff] }
   0x3   :  { %2686 = vmatprep.subr.msk.mxu0 %vm72_vm0, %v57_v2  ;;  %v55_v5 = vld [vmem:[%s3832_s0] sm:$0xff] }
   0x4   :  { %2687 = vmatpush3.msk.msra.mxu0 %vm72_vm0, %v57_v2  ;;  %2688 = vmatprep.mubr.msk.f32.mxu0 %vm65_vm1, %v55_v5 }
   0x5   :  { %20 = vsyncpa [#allocation6], 0  ;;  %2968 = vmatpush3.bf16.msra.mxu1 %v3392_v4  ;;  %2689 = vmatmul.mubr.msk.f32.vlgmr.msra.gmra.mrb[0].mxu0 %vm65_vm1, %v56_v6  ;;  %v3409_v9 = vpack.c.bf16 %v46_v8, %v45_v7  ;;  %vm3304_vm2 = vmmov 0   ;;  %v3305_v10 = vmov 0.0   ;;  %v158_v11 = vld [vmem:[%s3833_s1] sm:$0x3] }
   0x6   :  { %2969 = vmatprep.subr.bf16.mxu1 %v3303_v3  ;;  %2699 = vmatprep.mubr.msk.f32.mxu1 %vm3304_vm2, %v3305_v10  ;;  %vm164_vm3 = vcmask 261120   ;;  %v2507_v12 = vld [vmem:[%s3837_s5] ss:$0 sm:$0xff]  ;;  %s3306_s23 = smov 32   ;;  %v52_v33 = vld [vmem:[%s3839_s7 + $0x8] sm:$0xff]  ;;  %v53_v34 = vld [vmem:[%s3839_s7 + $0x10] sm:$0xff] }
   0x7   :  { %2972 = vmatprep.subr.bf16.mxu0 %v3303_v3  ;;  %2710 = vmatprep.mubr.msk.f32.mxu0 %vm3304_vm2, %v3305_v10  ;;  %v159_v21 = vld [vmem:[%s3834_s2] sm:$0x3]  ;;  %v54_v36 = vld [vmem:[%s3839_s7 + $0x18] sm:$0xff]  ;;  %v48_v38 = vld [vmem:[%s3838_s6 + $0x8] sm:$0xff]  ;;  %vm447_vm4 = vcmask 254976   ;;  %s3310_s16 = smov [#allocation5]  }
   0x8   :  { %v51_v32 = vld [vmem:[%s3839_s7] sm:$0xff]  ;;  %v49_v39 = vld [vmem:[%s3838_s6 + $0x10] sm:$0xff]  ;;  %v50_v40 = vld [vmem:[%s3838_s6 + $0x18] sm:$0xff]  ;;  %v3469_v41 = vpack.c.bf16 %v54_v36, %v53_v34  ;;  %s2490_s17 = sshll.u32 %s3310_s16, 4  ;;  %s2491_s17 = int_to_ptr.vmem [resolvable:$true] %s2490_s17 }
   0x9   :  { %2971 = vmatpush3.bf16.msra.mxu1 %v3409_v9  ;;  %v3451_v35 = vpack.c.bf16 %v52_v33, %v51_v32  ;;  %v47_v37 = vld [vmem:[%s3838_s6] sm:$0xff]  ;;  %v3475_v43 = vpack.c.bf16 %v50_v40, %v49_v39 }
   0xa   :  { %2978 = vmatprep.subr.bf16.mxu1 %v3303_v3  ;;  %v3471_v42 = vpack.c.bf16 %v48_v38, %v47_v37  ;;  %v2512_v44 = vld [vmem:[%s3833_s1 + $0x2] sm:$0x3]  ;;  %s3307_s1 = smov 64   ;;  %v3512_v52 = vld [vmem:[%s3840_s8] ss:$0 sm:$0xff] }
   0xb   :  { %2974 = vmatpush3.bf16.msra.mxu0 %v3451_v35  ;;  %v2513_v62 = vld [vmem:[%s3834_s2 + $0x2] sm:$0x3]  ;;  %s3308_s2 = smov 96  }
   0xc   :  { %2700 = vmatmul.mubr.msk.f32.vlgmr.msra.gmra.mrb[0].mxu1 %vm164_vm3, %v158_v11  ;;  %2975 = vmatprep.subr.bf16.mxu0 %v3303_v3 }
   0xd   :  { %2721 = vmatprep.mubr.msk.f32.mxu1 %vm3304_vm2, %v3305_v10  ;;  %2980 = vmatpush3.bf16.msra.mxu1 %v3471_v42 }
   0xe   :  { %2981 = vmatprep.subr.bf16.mxu1 %v3303_v3 }
   0xf   :  { %2977 = vmatpush3.bf16.msra.mxu0 %v3469_v41 }
  0x10   :  { %2984 = vmatprep.subr.bf16.mxu0 %v3303_v3 }
  0x11   :  { %2983 = vmatpush3.bf16.msra.mxu1 %v3475_v43 }
  0x12   :  { %2711 = vmatmul.mubr.msk.f32.vlgmr.msra.gmra.mrb[2].mxu0 %vm164_vm3, %v2512_v44  ;;  %2990 = vmatprep.subr.bf16.mxu1 %v3303_v3 }
  0x13   :  { %2986 = vmatpush3.bf16.msra.mxu0 %v3392_v4  ;;  %2732 = vmatprep.mubr.msk.f32.mxu0 %vm3304_vm2, %v3305_v10 }
  0x14   :  { %2987 = vmatprep.subr.bf16.mxu0 %v3303_v3 }
  0x17   :  { %2989 = vmatpush3.bf16.msra.mxu0 %v3409_v9 }
  0x18   :  { %2996 = vmatprep.subr.bf16.mxu0 %v3303_v3 }
  0xd8   :  { %v2690_v13 = vpop.f32.mrb[0].mxu0 }
  0xd9   :  { %v3428_v14 = vadd.f32 %v2690_v13, %v2507_v12  ;;  %v142_v15 = vpop.f32.mrb[1].mxu0 }
  0xda   :  { %v3430_v16 = vadd.f32 %v2507_v12, %v142_v15 }
  0xdc   :  { %v450_v51 = vrot.slane %v3430_v16, 2  ;;  %v723_v39 = vrot.slane %v3430_v16, 4 }
  0xdf   :  { %v234_v17 = vpop.f32.mrb[0].mxu1 }
  0xe0   :  { %v235_v18 = vadd.f32 %v234_v17, %v3430_v16  ;;  %v2701_v19 = vpop.f32.mrb[1].mxu1 }
  0xe2   :  { %3127 = vtanh.f32 %v235_v18  ;;  %v2515_v22 = vmul.f32 -1.442695, %v235_v18 }
  0xe4   :  { %3129 = vpow2.f32 %v2515_v22 }
  0xe5   :  { %v335_v48 = vpop.f32.mrb[2].mxu0 }
  0xe6   :  { %v2712_v49 = vpop.f32.mrb[3].mxu0 }
  0xec   :  { %v3128_v20 = vpop.eup %3127 }
  0xed   :  { %251 = vrot.lane.b32.xlu0 %v3128_v20, %s3306_s23 }
  0xee   :  { %v3130_v23 = vpop.eup %3129 }
  0xef   :  { %v241_v24 = vadd.f32 1.0, %v3130_v23 }
  0xf1   :  { %246 = vrot.lane.b32.xlu0 %v159_v21, %s3306_s23  ;;  %3131 = vrcp.f32 %v241_v24 }
  0xfb   :  { %v3132_v25 = vpop.eup %3131 }
 0x15f   :  { %v252_v26 = vpop.permute.xlu0 %251 }
 0x160   :  { %v254_v27 = vmul.f32 %v3132_v25, %v252_v26 }
 0x162   :  { %256 = vrot.lane.b32.xlu1 %v254_v27, %s3306_s23 }
 0x163   :  { %v247_v28 = vpop.permute.xlu0 %246 }
 0x164   :  { %v249_v29 = vmul.f32 %v3132_v25, %v247_v28 }
 0x1d4   :  { %v257_v30 = vpop.permute.xlu1 %256 }
 0x1d5   :  { %v3439_v31 = vadd.f32 %v257_v30, %v249_v29 }
 0x1d7   :  { %3133 = vtanh.f32 %v3439_v31 }
 0x1e1   :  { %v3134_v45 = vpop.eup %3133 }
 0x1e2   :  { %262 = vrot.lane.b32.xlu1 %v3134_v45, %s3306_s23 }
 0x254   :  { %v263_v46 = vpop.permute.xlu1 %262 }
 0x255   :  { %v265_v47 = vmul.f32 %v3132_v25, %v263_v46 }
 0x257   :  { %340 = vrot.lane.b32.xlu0 %v265_v47, %s3307_s1 }
 0x2c9   :  { %v341_v50 = vpop.permute.xlu0 %340 }
 0x2ca   :  { %2722 = vmatmul.mubr.msk.f32.vlgmr.msra.gmra.mrb[2].mxu1 %vm164_vm3, %v341_v50  ;;  %2733 = vmatmul.mubr.msk.f32.vlgmr.msra.gmra.mrb[4].mxu0 %vm164_vm3, %v341_v50 }
 0x2cb   :  { %2998 = vmatpush3.bf16.msra.mxu0 %v3471_v42  ;;  %2992 = vmatpush3.bf16.msra.mxu1 %v3451_v35 }
 0x2cc   :  { %2999 = vmatprep.subr.bf16.mxu0 %v3303_v3  ;;  %2993 = vmatprep.subr.bf16.mxu1 %v3303_v3 }
 0x2cd   :  { %2754 = vmatprep.mubr.msk.f32.mxu0 %vm3304_vm2, %v3305_v10  ;;  %2743 = vmatprep.mubr.msk.f32.mxu1 %vm3304_vm2, %v3305_v10 }
 0x2cf   :  { %3001 = vmatpush3.bf16.msra.mxu0 %v3475_v43  ;;  %2995 = vmatpush3.bf16.msra.mxu1 %v3469_v41 }
 0x2d0   :  { %3002 = vmatprep.subr.bf16.mxu1 %v3303_v3  ;;  %3008 = vmatprep.subr.bf16.mxu0 %v3303_v3 }
 0x39d   :  { %v410_v53 = vpop.f32.mrb[2].mxu1  ;;  %v518_v54 = vpop.f32.mrb[4].mxu0 }
 0x39e   :  { %v411_v55 = vadd.f32 %v410_v53, %v335_v48  ;;  %v519_v56 = vadd.f32 %v518_v54, %v450_v51  ;;  %v2723_v57 = vpop.f32.mrb[3].mxu1  ;;  %v2734_v58 = vpop.f32.mrb[5].mxu0 }
 0x3a0   :  { %v414_v59 = vadd.f32 %v3512_v52, %v411_v55  ;;  %3135 = vtanh.f32 %v519_v56  ;;  %v2520_v63 = vmul.f32 -1.442695, %v519_v56 }
 0x3a2   :  { %3137 = vtanh.f32 %v414_v59  ;;  %v2518_v0 = vmul.f32 -1.442695, %v414_v59 }
 0x3a3   :  { %3139 = vpow2.f32 %v2520_v63 }
 0x3a4   :  { %3141 = vpow2.f32 %v2518_v0 }
 0x3aa   :  { %v3136_v60 = vpop.eup %3135 }
 0x3ab   :  { %531 = vrot.lane.b32.xlu0 %v3136_v60, %s3306_s23 }
 0x3ac   :  { %v3138_v61 = vpop.eup %3137 }
 0x3ad   :  { %428 = vrot.lane.b32.xlu1 %v3138_v61, %s3306_s23  ;;  %v3140_v1 = vpop.eup %3139 }
 0x3ae   :  { %v3142_v2 = vpop.eup %3141  ;;  %v525_v5 = vadd.f32 1.0, %v3140_v1 }
 0x3af   :  { %v418_v6 = vadd.f32 1.0, %v3142_v2 }
 0x3b0   :  { %3143 = vrcp.f32 %v525_v5 }
 0x3b1   :  { %423 = vrot.lane.b32.xlu1 %v2513_v62, %s3306_s23  ;;  %3145 = vrcp.f32 %v418_v6 }
 0x3ba   :  { %v3144_v7 = vpop.eup %3143 }
 0x3bb   :  { %v3146_v12 = vpop.eup %3145  ;;  %v529_v18 = vmul.f32 %v3144_v7, %v3439_v31 }
 0x41d   :  { %v532_v8 = vpop.permute.xlu0 %531 }
 0x41e   :  { %v534_v11 = vmul.f32 %v3144_v7, %v532_v8 }
 0x41f   :  { %v429_v13 = vpop.permute.xlu1 %428 }
 0x420   :  { %v431_v15 = vmul.f32 %v3146_v12, %v429_v13  ;;  %536 = vrot.lane.b32.xlu1 %v534_v11, %s3306_s23 }
 0x422   :  { %433 = vrot.lane.b32.xlu0 %v431_v15, %s3306_s23 }
 0x423   :  { %v424_v17 = vpop.permute.xlu1 %423 }
 0x424   :  { %v426_v20 = vmul.f32 %v3146_v12, %v424_v17 }
 0x492   :  { %v537_v19 = vpop.permute.xlu1 %536 }
 0x493   :  { %v3524_v21 = vadd.f32 %v537_v19, %v529_v18 }
 0x494   :  { %v434_v22 = vpop.permute.xlu0 %433 }
 0x495   :  { %3147 = vtanh.f32 %v3524_v21  ;;  %v3527_v23 = vadd.f32 %v434_v22, %v426_v20  ;;  %v996_v22 = vrot.slane %v3430_v16, 6 }
 0x497   :  { %3149 = vtanh.f32 %v3527_v23 }
 0x49f   :  { %v3148_v24 = vpop.eup %3147 }
 0x4a0   :  { %542 = vrot.lane.b32.xlu1 %v3148_v24, %s3306_s23 }
 0x4a1   :  { %v3150_v25 = vpop.eup %3149 }
 0x4a2   :  { %439 = vrot.lane.b32.xlu0 %v3150_v25, %s3306_s23 }
 0x512   :  { %v543_v26 = vpop.permute.xlu1 %542 }
 0x513   :  { %v545_v27 = vmul.f32 %v3144_v7, %v543_v26 }
 0x514   :  { %v440_v28 = vpop.permute.xlu0 %439 }
 0x515   :  { %v442_v29 = vmul.f32 %v3146_v12, %v440_v28  ;;  %619 = vrot.lane.b32.xlu1 %v545_v27, %s3307_s1 }
 0x517   :  { %444 = vrot.lane.b32.xlu0 %v442_v29, %s3307_s1 }
 0x587   :  { %v620_v30 = vpop.permute.xlu1 %619 }
 0x588   :  { %2755 = vmatmul.mubr.msk.f32.vlgmr.msra.gmra.mrb[6].mxu0 %vm164_vm3, %v620_v30 }
 0x589   :  { %v445_v31 = vpop.permute.xlu0 %444  ;;  %3010 = vmatpush3.bf16.msra.mxu0 %v3451_v35  ;;  %2776 = vmatprep.mubr.msk.f32.mxu0 %vm3304_vm2, %v3305_v10 }
 0x58a   :  { %448 = vst.msk [vmem:[#allocation2] sm:$0x3] %vm447_vm4, %v445_v31  ;;  %2744 = vmatmul.mubr.msk.f32.vlgmr.msra.gmra.mrb[4].mxu1 %vm164_vm3, %v445_v31  ;;  %3011 = vmatprep.subr.bf16.mxu0 %v3303_v3 }
 0x58b   :  { %3004 = vmatpush3.bf16.msra.mxu1 %v3392_v4  ;;  %2765 = vmatprep.mubr.msk.f32.mxu1 %vm3304_vm2, %v3305_v10 }
 0x58c   :  { %3005 = vmatprep.subr.bf16.mxu1 %v3303_v3 }
 0x58d   :  { %3013 = vmatpush3.bf16.msra.mxu0 %v3469_v41 }
 0x58e   :  { %3020 = vmatprep.subr.bf16.mxu0 %v3303_v3 }
 0x58f   :  { %3007 = vmatpush3.bf16.msra.mxu1 %v3409_v9 }
 0x590   :  { %3014 = vmatprep.subr.bf16.mxu1 %v3303_v3 }
 0x592   :  { %2766 = vmatmul.mubr.msk.f32.vlgmr.msra.gmra.mrb[6].mxu1 %vm164_vm3, %v620_v30 }
 0x593   :  { %3016 = vmatpush3.bf16.msra.mxu1 %v3471_v42  ;;  %2787 = vmatprep.mubr.msk.f32.mxu1 %vm3304_vm2, %v3305_v10 }
 0x594   :  { %3017 = vmatprep.subr.bf16.mxu1 %v3303_v3 }
 0x597   :  { %3019 = vmatpush3.bf16.msra.mxu1 %v3475_v43 }
 0x598   :  { %3026 = vmatprep.subr.bf16.mxu1 %v3303_v3 }
 0x65b   :  { %v689_v32 = vpop.f32.mrb[6].mxu0 }
 0x65c   :  { %v2756_v33 = vpop.f32.mrb[7].mxu0 }
 0x65d   :  { %v614_v34 = vpop.f32.mrb[4].mxu1 }
 0x65e   :  { %v690_v36 = vadd.f32 %v689_v32, %v614_v34  ;;  %v2745_v37 = vpop.f32.mrb[5].mxu1 }
 0x660   :  { %v693_v38 = vadd.f32 %v3512_v52, %v690_v36 }
 0x662   :  { %3151 = vtanh.f32 %v693_v38  ;;  %v2523_v48 = vmul.f32 -1.442695, %v693_v38 }
 0x665   :  { %v791_v40 = vpop.f32.mrb[6].mxu1 }
 0x666   :  { %v792_v44 = vadd.f32 %v791_v40, %v723_v39  ;;  %v2767_v45 = vpop.f32.mrb[7].mxu1 }
 0x668   :  { %3153 = vtanh.f32 %v792_v44  ;;  %v2525_v49 = vmul.f32 -1.442695, %v792_v44 }
 0x669   :  { %3155 = vpow2.f32 %v2523_v48 }
 0x66a   :  { %3157 = vpow2.f32 %v2525_v49 }
 0x66c   :  { %v3152_v46 = vpop.eup %3151 }
 0x66d   :  { %703 = vrot.lane.b32.xlu0 %v3152_v46, %s3306_s23 }
 0x672   :  { %v3154_v47 = vpop.eup %3153 }
 0x673   :  { %804 = vrot.lane.b32.xlu1 %v3154_v47, %s3306_s23  ;;  %v3156_v50 = vpop.eup %3155 }
 0x674   :  { %v697_v51 = vadd.f32 1.0, %v3156_v50  ;;  %v3158_v53 = vpop.eup %3157 }
 0x675   :  { %v798_v54 = vadd.f32 1.0, %v3158_v53 }
 0x676   :  { %3159 = vrcp.f32 %v697_v51 }
 0x677   :  { %3161 = vrcp.f32 %v798_v54 }
 0x680   :  { %v3160_v55 = vpop.eup %3159 }
 0x681   :  { %v3162_v58 = vpop.eup %3161  ;;  %v701_v61 = vmul.f32 %v3160_v55, %v3527_v23 }
 0x682   :  { %v802_v0 = vmul.f32 %v3162_v58, %v3524_v21 }
 0x6df   :  { %v704_v56 = vpop.permute.xlu0 %703 }
 0x6e0   :  { %v706_v57 = vmul.f32 %v3160_v55, %v704_v56 }
 0x6e2   :  { %708 = vrot.lane.b32.xlu0 %v706_v57, %s3306_s23 }
 0x6e5   :  { %v805_v59 = vpop.permute.xlu1 %804 }
 0x6e6   :  { %v807_v60 = vmul.f32 %v3162_v58, %v805_v59 }
 0x6e8   :  { %809 = vrot.lane.b32.xlu1 %v807_v60, %s3306_s23 }
 0x754   :  { %v709_v62 = vpop.permute.xlu0 %708 }
 0x755   :  { %v3563_v63 = vadd.f32 %v709_v62, %v701_v61 }
 0x757   :  { %3163 = vtanh.f32 %v3563_v63 }
 0x75a   :  { %v810_v1 = vpop.permute.xlu1 %809 }
 0x75b   :  { %v3567_v2 = vadd.f32 %v810_v1, %v802_v0 }
 0x75d   :  { %3165 = vtanh.f32 %v3567_v2 }
 0x761   :  { %v3164_v5 = vpop.eup %3163 }
 0x762   :  { %714 = vrot.lane.b32.xlu0 %v3164_v5, %s3306_s23 }
 0x767   :  { %v3166_v6 = vpop.eup %3165 }
 0x768   :  { %815 = vrot.lane.b32.xlu1 %v3166_v6, %s3306_s23 }
 0x7d4   :  { %v715_v7 = vpop.permute.xlu0 %714 }
 0x7d5   :  { %v717_v8 = vmul.f32 %v3160_v55, %v715_v7 }
 0x7d7   :  { %719 = vrot.lane.b32.xlu0 %v717_v8, %s3307_s1 }
 0x7da   :  { %v816_v11 = vpop.permute.xlu1 %815 }
 0x7db   :  { %v818_v12 = vmul.f32 %v3162_v58, %v816_v11 }
 0x7dd   :  { %892 = vrot.lane.b32.xlu1 %v818_v12, %s3307_s1 }
 0x849   :  { %v720_v13 = vpop.permute.xlu0 %719 }
 0x84a   :  { %722 = vst.msk [vmem:[#allocation2 + $0x2] sm:$0x3] %vm447_vm4, %v720_v13  ;;  %2777 = vmatmul.mubr.msk.f32.vlgmr.msra.gmra.mrb[8].mxu0 %vm164_vm3, %v720_v13 }
 0x84b   :  { %3022 = vmatpush3.bf16.msra.mxu0 %v3392_v4  ;;  %2798 = vmatprep.mubr.msk.f32.mxu0 %vm3304_vm2, %v3305_v10 }
 0x84c   :  { %3023 = vmatprep.subr.bf16.mxu0 %v3303_v3 }
 0x84f   :  { %3025 = vmatpush3.bf16.msra.mxu0 %v3409_v9  ;;  %v893_v15 = vpop.permute.xlu1 %892 }
 0x850   :  { %2788 = vmatmul.mubr.msk.f32.vlgmr.msra.gmra.mrb[8].mxu1 %vm164_vm3, %v893_v15  ;;  %3032 = vmatprep.subr.bf16.mxu0 %v3303_v3 }
 0x851   :  { %3028 = vmatpush3.bf16.msra.mxu1 %v3451_v35  ;;  %2809 = vmatprep.mubr.msk.f32.mxu1 %vm3304_vm2, %v3305_v10 }
 0x852   :  { %2799 = vmatmul.mubr.msk.f32.vlgmr.msra.gmra.mrb[10].mxu0 %vm164_vm3, %v893_v15  ;;  %3029 = vmatprep.subr.bf16.mxu1 %v3303_v3 }
 0x853   :  { %3034 = vmatpush3.bf16.msra.mxu0 %v3471_v42  ;;  %2820 = vmatprep.mubr.msk.f32.mxu0 %vm3304_vm2, %v3305_v10 }
 0x854   :  { %3035 = vmatprep.subr.bf16.mxu0 %v3303_v3 }
 0x855   :  { %3031 = vmatpush3.bf16.msra.mxu1 %v3469_v41 }
 0x856   :  { %3038 = vmatprep.subr.bf16.mxu1 %v3303_v3 }
 0x857   :  { %3037 = vmatpush3.bf16.msra.mxu0 %v3475_v43 }
 0x858   :  { %3044 = vmatprep.subr.bf16.mxu0 %v3303_v3 }
 0x91d   :  { %v887_v17 = vpop.f32.mrb[8].mxu0 }
 0x91e   :  { %v2778_v18 = vpop.f32.mrb[9].mxu0 }
 0x923   :  { %v962_v19 = vpop.f32.mrb[8].mxu1 }
 0x924   :  { %v963_v20 = vadd.f32 %v962_v19, %v887_v17  ;;  %v2789_v21 = vpop.f32.mrb[9].mxu1 }
 0x925   :  { %v1064_v23 = vpop.f32.mrb[10].mxu0 }
 0x926   :  { %v966_v24 = vadd.f32 %v3512_v52, %v963_v20  ;;  %v1065_v25 = vadd.f32 %v1064_v23, %v996_v22  ;;  %v2800_v26 = vpop.f32.mrb[11].mxu0 }
 0x928   :  { %3167 = vtanh.f32 %v966_v24  ;;  %v2528_v29 = vmul.f32 -1.442695, %v966_v24  ;;  %v2530_v30 = vmul.f32 -1.442695, %v1065_v25 }
 0x929   :  { %3169 = vtanh.f32 %v1065_v25 }
 0x92a   :  { %3171 = vpow2.f32 %v2528_v29 }
 0x92b   :  { %3173 = vpow2.f32 %v2530_v30 }
 0x932   :  { %v3168_v27 = vpop.eup %3167 }
 0x933   :  { %v3170_v28 = vpop.eup %3169  ;;  %976 = vrot.lane.b32.xlu0 %v3168_v27, %s3306_s23 }
 0x934   :  { %1077 = vrot.lane.b32.xlu1 %v3170_v28, %s3306_s23  ;;  %v3172_v31 = vpop.eup %3171 }
 0x935   :  { %v3174_v32 = vpop.eup %3173  ;;  %v970_v16 = vadd.f32 1.0, %v3172_v31 }
 0x936   :  { %v1071_v33 = vadd.f32 1.0, %v3174_v32 }
 0x937   :  { %3175 = vrcp.f32 %v970_v16 }
 0x938   :  { %3177 = vrcp.f32 %v1071_v33 }
 0x941   :  { %v3176_v34 = vpop.eup %3175 }
 0x942   :  { %v3178_v37 = vpop.eup %3177  ;;  %v974_v44 = vmul.f32 %v3176_v34, %v3563_v63 }
 0x943   :  { %v1075_v45 = vmul.f32 %v3178_v37, %v3567_v2 }
 0x9a5   :  { %v977_v36 = vpop.permute.xlu0 %976 }
 0x9a6   :  { %v1078_v38 = vpop.permute.xlu1 %1077  ;;  %v979_v39 = vmul.f32 %v3176_v34, %v977_v36 }
 0x9a7   :  { %v1080_v40 = vmul.f32 %v3178_v37, %v1078_v38 }
 0x9a8   :  { %981 = vrot.lane.b32.xlu0 %v979_v39, %s3306_s23 }
 0x9a9   :  { %1082 = vrot.lane.b32.xlu1 %v1080_v40, %s3306_s23 }
 0xa1a   :  { %v982_v46 = vpop.permute.xlu0 %981 }
 0xa1b   :  { %v1083_v47 = vpop.permute.xlu1 %1082  ;;  %v3604_v48 = vadd.f32 %v982_v46, %v974_v44  ;;  %v1541_v46 = vrot.slane %v3428_v14, 2 }
 0xa1c   :  { %v3606_v49 = vadd.f32 %v1083_v47, %v1075_v45 }
 0xa1d   :  { %3179 = vtanh.f32 %v3604_v48 }
 0xa1e   :  { %3181 = vtanh.f32 %v3606_v49 }
 0xa27   :  { %v3180_v50 = vpop.eup %3179 }
 0xa28   :  { %v3182_v51 = vpop.eup %3181  ;;  %987 = vrot.lane.b32.xlu0 %v3180_v50, %s3306_s23 }
 0xa29   :  { %1088 = vrot.lane.b32.xlu1 %v3182_v51, %s3306_s23 }
 0xa9a   :  { %v988_v53 = vpop.permute.xlu0 %987 }
 0xa9b   :  { %v1089_v54 = vpop.permute.xlu1 %1088  ;;  %v990_v55 = vmul.f32 %v3176_v34, %v988_v53 }
 0xa9c   :  { %v1091_v56 = vmul.f32 %v3178_v37, %v1089_v54 }
 0xa9d   :  { %992 = vrot.lane.b32.xlu0 %v990_v55, %s3307_s1 }
 0xa9e   :  { %1165 = vrot.lane.b32.xlu1 %v1091_v56, %s3307_s1 }
 0xb0f   :  { %v993_v57 = vpop.permute.xlu0 %992 }
 0xb10   :  { %v1166_v58 = vpop.permute.xlu1 %1165  ;;  %995 = vst.msk [vmem:[#allocation2 + $0x4] sm:$0x3] %vm447_vm4, %v993_v57  ;;  %2810 = vmatmul.mubr.msk.f32.vlgmr.msra.gmra.mrb[10].mxu1 %vm164_vm3, %v993_v57 }
 0xb11   :  { %2821 = vmatmul.mubr.msk.f32.vlgmr.msra.gmra.mrb[12].mxu0 %vm164_vm3, %v1166_v58  ;;  %3040 = vmatpush3.bf16.msra.mxu1 %v3392_v4 }
 0xb12   :  { %3041 = vmatprep.subr.bf16.mxu1 %v3303_v3  ;;  %2831 = vmatprep.mubr.msk.f32.mxu1 %vm3304_vm2, %v3305_v10 }
 0xb13   :  { %3046 = vmatpush3.bf16.msra.mxu0 %v3451_v35  ;;  %2842 = vmatprep.mubr.msk.f32.mxu0 %vm3304_vm2, %v3305_v10 }
 0xb14   :  { %3047 = vmatprep.subr.bf16.mxu0 %v3303_v3 }
 0xb15   :  { %3043 = vmatpush3.bf16.msra.mxu1 %v3409_v9 }
 0xb16   :  { %3050 = vmatprep.subr.bf16.mxu1 %v3303_v3 }
 0xb17   :  { %3049 = vmatpush3.bf16.msra.mxu0 %v3469_v41 }
 0xb18   :  { %2832 = vmatmul.mubr.msk.f32.vlgmr.msra.gmra.mrb[12].mxu1 %vm164_vm3, %v1166_v58  ;;  %3056 = vmatprep.subr.bf16.mxu0 %v3303_v3 }
 0xb19   :  { %3052 = vmatpush3.bf16.msra.mxu1 %v3471_v42  ;;  %2853 = vmatprep.mubr.msk.f32.mxu1 %vm3304_vm2, %v3305_v10 }
 0xb1a   :  { %3053 = vmatprep.subr.bf16.mxu1 %v3303_v3 }
 0xb1d   :  { %3055 = vmatpush3.bf16.msra.mxu1 %v3475_v43 }
 0xb1e   :  { %3062 = vmatprep.subr.bf16.mxu1 %v3303_v3 }
 0xbe3   :  { %v1160_v59 = vpop.f32.mrb[10].mxu1 }
 0xbe4   :  { %v1235_v60 = vpop.f32.mrb[12].mxu0  ;;  %v2811_v61 = vpop.f32.mrb[11].mxu1 }
 0xbe5   :  { %v1236_v62 = vadd.f32 %v1235_v60, %v1160_v59  ;;  %v2822_v63 = vpop.f32.mrb[13].mxu0 }
 0xbe7   :  { %v1239_v0 = vadd.f32 %v3512_v52, %v1236_v62 }
 0xbe9   :  { %3183 = vtanh.f32 %v1239_v0  ;;  %v2533_v8 = vmul.f32 -1.442695, %v1239_v0 }
 0xbeb   :  { %v1335_v1 = vpop.f32.mrb[12].mxu1 }
 0xbec   :  { %v1336_v2 = vadd.f32 %v1335_v1, %v3428_v14  ;;  %v2833_v5 = vpop.f32.mrb[13].mxu1 }
 0xbee   :  { %3185 = vtanh.f32 %v1336_v2  ;;  %v2535_v11 = vmul.f32 -1.442695, %v1336_v2 }
 0xbef   :  { %3187 = vpow2.f32 %v2533_v8 }
 0xbf0   :  { %3189 = vpow2.f32 %v2535_v11 }
 0xbf3   :  { %v3184_v6 = vpop.eup %3183 }
 0xbf4   :  { %1249 = vrot.lane.b32.xlu0 %v3184_v6, %s3306_s23 }
 0xbf8   :  { %v3186_v7 = vpop.eup %3185 }
 0xbf9   :  { %1348 = vrot.lane.b32.xlu1 %v3186_v7, %s3306_s23  ;;  %v3188_v12 = vpop.eup %3187 }
 0xbfa   :  { %v1243_v13 = vadd.f32 1.0, %v3188_v12  ;;  %v3190_v15 = vpop.eup %3189 }
 0xbfb   :  { %v1342_v17 = vadd.f32 1.0, %v3190_v15 }
 0xbfc   :  { %3191 = vrcp.f32 %v1243_v13 }
 0xbfd   :  { %3193 = vrcp.f32 %v1342_v17 }
 0xc06   :  { %v3192_v18 = vpop.eup %3191 }
 0xc07   :  { %v3194_v21 = vpop.eup %3193  ;;  %v1247_v24 = vmul.f32 %v3192_v18, %v3604_v48 }
 0xc08   :  { %v1346_v27 = vmul.f32 %v3194_v21, %v3606_v49 }
 0xc66   :  { %v1250_v19 = vpop.permute.xlu0 %1249 }
 0xc67   :  { %v1252_v20 = vmul.f32 %v3192_v18, %v1250_v19 }
 0xc69   :  { %1254 = vrot.lane.b32.xlu0 %v1252_v20, %s3306_s23 }
 0xc6b   :  { %v1349_v22 = vpop.permute.xlu1 %1348 }
 0xc6c   :  { %v1351_v23 = vmul.f32 %v3194_v21, %v1349_v22 }
 0xc6e   :  { %1353 = vrot.lane.b32.xlu1 %v1351_v23, %s3306_s23 }
 0xcdb   :  { %v1255_v25 = vpop.permute.xlu0 %1254 }
 0xcdc   :  { %v3643_v26 = vadd.f32 %v1255_v25, %v1247_v24 }
 0xcde   :  { %3195 = vtanh.f32 %v3643_v26 }
 0xce0   :  { %v1354_v28 = vpop.permute.xlu1 %1353 }
 0xce1   :  { %v3647_v29 = vadd.f32 %v1354_v28, %v1346_v27  ;;  %v1814_v28 = vrot.slane %v3428_v14, 4 }
 0xce3   :  { %3197 = vtanh.f32 %v3647_v29 }
 0xce8   :  { %v3196_v30 = vpop.eup %3195 }
 0xce9   :  { %1260 = vrot.lane.b32.xlu0 %v3196_v30, %s3306_s23 }
 0xced   :  { %v3198_v31 = vpop.eup %3197 }
 0xcee   :  { %1359 = vrot.lane.b32.xlu1 %v3198_v31, %s3306_s23 }
 0xd5b   :  { %v1261_v32 = vpop.permute.xlu0 %1260 }
 0xd5c   :  { %v1263_v16 = vmul.f32 %v3192_v18, %v1261_v32 }
 0xd5e   :  { %1265 = vrot.lane.b32.xlu0 %v1263_v16, %s3307_s1 }
 0xd60   :  { %v1360_v33 = vpop.permute.xlu1 %1359 }
 0xd61   :  { %v1362_v34 = vmul.f32 %v3194_v21, %v1360_v33 }
 0xd63   :  { %1436 = vrot.lane.b32.xlu1 %v1362_v34, %s3307_s1 }
 0xdd0   :  { %v1266_v36 = vpop.permute.xlu0 %1265 }
 0xdd1   :  { %1268 = vst.msk [vmem:[#allocation2 + $0x6] sm:$0x3] %vm447_vm4, %v1266_v36  ;;  %2843 = vmatmul.mubr.msk.f32.vlgmr.msra.gmra.mrb[14].mxu0 %vm164_vm3, %v1266_v36 }
 0xdd2   :  { %3058 = vmatpush3.bf16.msra.mxu0 %v3392_v4  ;;  %2864 = vmatprep.mubr.msk.f32.mxu0 %vm3304_vm2, %v3305_v10 }
 0xdd3   :  { %3059 = vmatprep.subr.bf16.mxu0 %v3303_v3 }
 0xdd5   :  { %v1437_v37 = vpop.permute.xlu1 %1436 }
 0xdd6   :  { %3061 = vmatpush3.bf16.msra.mxu0 %v3409_v9  ;;  %2854 = vmatmul.mubr.msk.f32.vlgmr.msra.gmra.mrb[14].mxu1 %vm164_vm3, %v1437_v37 }
 0xdd7   :  { %3064 = vmatpush3.bf16.msra.mxu1 %v3451_v35  ;;  %3068 = vmatprep.subr.bf16.mxu0 %v3303_v3 }
 0xdd8   :  { %3065 = vmatprep.subr.bf16.mxu1 %v3303_v3  ;;  %2875 = vmatprep.mubr.msk.f32.mxu1 %vm3304_vm2, %v3305_v10 }
 0xdd9   :  { %2865 = vmatmul.mubr.msk.f32.vlgmr.msra.gmra.mrb[16].mxu0 %vm164_vm3, %v1437_v37 }
 0xdda   :  { %3070 = vmatpush3.bf16.msra.mxu0 %v3471_v42  ;;  %2886 = vmatprep.mubr.msk.f32.mxu0 %vm3304_vm2, %v3305_v10 }
 0xddb   :  { %3067 = vmatpush3.bf16.msra.mxu1 %v3469_v41  ;;  %3071 = vmatprep.subr.bf16.mxu0 %v3303_v3 }
 0xddc   :  { %3074 = vmatprep.subr.bf16.mxu1 %v3303_v3 }
 0xdde   :  { %3073 = vmatpush3.bf16.msra.mxu0 %v3475_v43 }
 0xddf   :  { %3080 = vmatprep.subr.bf16.mxu0 %v3303_v3 }
 0xea4   :  { %v1431_v38 = vpop.f32.mrb[14].mxu0 }
 0xea5   :  { %v2844_v39 = vpop.f32.mrb[15].mxu0 }
 0xea9   :  { %v1506_v40 = vpop.f32.mrb[14].mxu1 }
 0xeaa   :  { %v1507_v44 = vadd.f32 %v1506_v40, %v1431_v38  ;;  %v2855_v45 = vpop.f32.mrb[15].mxu1 }
 0xeac   :  { %v1510_v47 = vadd.f32 %v3512_v52, %v1507_v44  ;;  %v1609_v48 = vpop.f32.mrb[16].mxu0 }
 0xead   :  { %v1610_v49 = vadd.f32 %v1609_v48, %v1541_v46  ;;  %v2866_v50 = vpop.f32.mrb[17].mxu0 }
 0xeae   :  { %3199 = vtanh.f32 %v1510_v47  ;;  %v2538_v54 = vmul.f32 -1.442695, %v1510_v47 }
 0xeaf   :  { %3201 = vtanh.f32 %v1610_v49  ;;  %v2540_v55 = vmul.f32 -1.442695, %v1610_v49 }
 0xeb0   :  { %3203 = vpow2.f32 %v2538_v54 }
 0xeb1   :  { %3205 = vpow2.f32 %v2540_v55 }
 0xeb8   :  { %v3200_v51 = vpop.eup %3199 }
 0xeb9   :  { %v3202_v53 = vpop.eup %3201  ;;  %1520 = vrot.lane.b32.xlu0 %v3200_v51, %s3306_s23 }
 0xeba   :  { %1622 = vrot.lane.b32.xlu1 %v3202_v53, %s3306_s23  ;;  %v3204_v56 = vpop.eup %3203 }
 0xebb   :  { %v3206_v57 = vpop.eup %3205  ;;  %v1514_v58 = vadd.f32 1.0, %v3204_v56 }
 0xebc   :  { %v1616_v59 = vadd.f32 1.0, %v3206_v57 }
 0xebd   :  { %3207 = vrcp.f32 %v1514_v58 }
 0xebe   :  { %3209 = vrcp.f32 %v1616_v59 }
 0xec7   :  { %v3208_v60 = vpop.eup %3207 }
 0xec8   :  { %v3210_v62 = vpop.eup %3209  ;;  %v1518_v2 = vmul.f32 %v3208_v60, %v3643_v26 }
 0xec9   :  { %v1620_v5 = vmul.f32 %v3210_v62, %v3647_v29 }
 0xf2b   :  { %v1521_v61 = vpop.permute.xlu0 %1520 }
 0xf2c   :  { %v1623_v63 = vpop.permute.xlu1 %1622  ;;  %v1523_v0 = vmul.f32 %v3208_v60, %v1521_v61 }
 0xf2d   :  { %v1625_v1 = vmul.f32 %v3210_v62, %v1623_v63 }
 0xf2e   :  { %1525 = vrot.lane.b32.xlu0 %v1523_v0, %s3306_s23 }
 0xf2f   :  { %1627 = vrot.lane.b32.xlu1 %v1625_v1, %s3306_s23 }
 0xfa0   :  { %v1526_v6 = vpop.permute.xlu0 %1525 }
 0xfa1   :  { %v1628_v7 = vpop.permute.xlu1 %1627  ;;  %v3684_v8 = vadd.f32 %v1526_v6, %v1518_v2  ;;  %v2087_v2 = vrot.slane %v3428_v14, 6 }
 0xfa2   :  { %v3686_v11 = vadd.f32 %v1628_v7, %v1620_v5 }
 0xfa3   :  { %3211 = vtanh.f32 %v3684_v8 }
 0xfa4   :  { %3213 = vtanh.f32 %v3686_v11 }
 0xfad   :  { %v3212_v12 = vpop.eup %3211 }
 0xfae   :  { %v3214_v13 = vpop.eup %3213  ;;  %1531 = vrot.lane.b32.xlu0 %v3212_v12, %s3306_s23 }
 0xfaf   :  { %1633 = vrot.lane.b32.xlu1 %v3214_v13, %s3306_s23 }
0x1020   :  { %v1532_v15 = vpop.permute.xlu0 %1531 }
0x1021   :  { %v1634_v17 = vpop.permute.xlu1 %1633  ;;  %v1534_v18 = vmul.f32 %v3208_v60, %v1532_v15 }
0x1022   :  { %v1636_v19 = vmul.f32 %v3210_v62, %v1634_v17 }
0x1023   :  { %1536 = vrot.lane.b32.xlu0 %v1534_v18, %s3307_s1 }
0x1024   :  { %1710 = vrot.lane.b32.xlu1 %v1636_v19, %s3307_s1 }
0x1095   :  { %v1537_v20 = vpop.permute.xlu0 %1536 }
0x1096   :  { %v1711_v21 = vpop.permute.xlu1 %1710  ;;  %1539 = vst.msk [vmem:[#allocation2 + $0x8] sm:$0x3] %vm447_vm4, %v1537_v20  ;;  %2876 = vmatmul.mubr.msk.f32.vlgmr.msra.gmra.mrb[16].mxu1 %vm164_vm3, %v1537_v20 }
0x1097   :  { %2887 = vmatmul.mubr.msk.f32.vlgmr.msra.gmra.mrb[18].mxu0 %vm164_vm3, %v1711_v21  ;;  %3076 = vmatpush3.bf16.msra.mxu1 %v3392_v4 }
0x1098   :  { %3077 = vmatprep.subr.bf16.mxu1 %v3303_v3  ;;  %2897 = vmatprep.mubr.msk.f32.mxu1 %vm3304_vm2, %v3305_v10 }
0x1099   :  { %3082 = vmatpush3.bf16.msra.mxu0 %v3451_v35  ;;  %2908 = vmatprep.mubr.msk.f32.mxu0 %vm3304_vm2, %v3305_v10 }
0x109a   :  { %3083 = vmatprep.subr.bf16.mxu0 %v3303_v3 }
0x109b   :  { %3079 = vmatpush3.bf16.msra.mxu1 %v3409_v9 }
0x109c   :  { %3086 = vmatprep.subr.bf16.mxu1 %v3303_v3 }
0x109d   :  { %3085 = vmatpush3.bf16.msra.mxu0 %v3469_v41 }
0x109e   :  { %2898 = vmatmul.mubr.msk.f32.vlgmr.msra.gmra.mrb[18].mxu1 %vm164_vm3, %v1711_v21  ;;  %3092 = vmatprep.subr.bf16.mxu0 %v3303_v3 }
0x109f   :  { %3088 = vmatpush3.bf16.msra.mxu1 %v3471_v42  ;;  %2919 = vmatprep.mubr.msk.f32.mxu1 %vm3304_vm2, %v3305_v10 }
0x10a0   :  { %3089 = vmatprep.subr.bf16.mxu1 %v3303_v3 }
0x10a3   :  { %3091 = vmatpush3.bf16.msra.mxu1 %v3475_v43 }
0x10a4   :  { %3098 = vmatprep.subr.bf16.mxu1 %v3303_v3 }
0x1169   :  { %v1705_v22 = vpop.f32.mrb[16].mxu1 }
0x116a   :  { %v1780_v23 = vpop.f32.mrb[18].mxu0  ;;  %v2877_v24 = vpop.f32.mrb[17].mxu1 }
0x116b   :  { %v1781_v25 = vadd.f32 %v1780_v23, %v1705_v22  ;;  %v2888_v26 = vpop.f32.mrb[19].mxu0 }
0x116d   :  { %v1784_v27 = vadd.f32 %v3512_v52, %v1781_v25 }
0x116f   :  { %3215 = vtanh.f32 %v1784_v27  ;;  %v2543_v33 = vmul.f32 -1.442695, %v1784_v27 }
0x1171   :  { %v1882_v29 = vpop.f32.mrb[18].mxu1 }
0x1172   :  { %v1883_v30 = vadd.f32 %v1882_v29, %v1814_v28  ;;  %v2899_v31 = vpop.f32.mrb[19].mxu1 }
0x1174   :  { %3217 = vtanh.f32 %v1883_v30  ;;  %v2545_v34 = vmul.f32 -1.442695, %v1883_v30 }
0x1175   :  { %3219 = vpow2.f32 %v2543_v33 }
0x1176   :  { %3221 = vpow2.f32 %v2545_v34  ;;  %v2360_v34 = vld [vmem:[#allocation2] sm:$0xff] }
0x1179   :  { %v3216_v32 = vpop.eup %3215 }
0x117a   :  { %1794 = vrot.lane.b32.xlu0 %v3216_v32, %s3306_s23 }
0x117e   :  { %v3218_v16 = vpop.eup %3217 }
0x117f   :  { %1895 = vrot.lane.b32.xlu1 %v3218_v16, %s3306_s23  ;;  %v3220_v36 = vpop.eup %3219 }
0x1180   :  { %v1788_v37 = vadd.f32 1.0, %v3220_v36  ;;  %v3222_v38 = vpop.eup %3221 }
0x1181   :  { %v1889_v39 = vadd.f32 1.0, %v3222_v38 }
0x1182   :  { %3223 = vrcp.f32 %v1788_v37 }
0x1183   :  { %3225 = vrcp.f32 %v1889_v39 }
0x118c   :  { %v3224_v40 = vpop.eup %3223 }
0x118d   :  { %v3226_v46 = vpop.eup %3225  ;;  %v1792_v49 = vmul.f32 %v3224_v40, %v3684_v8 }
0x118e   :  { %v1893_v53 = vmul.f32 %v3226_v46, %v3686_v11 }
0x11ec   :  { %v1795_v44 = vpop.permute.xlu0 %1794 }
0x11ed   :  { %v1797_v45 = vmul.f32 %v3224_v40, %v1795_v44 }
0x11ef   :  { %1799 = vrot.lane.b32.xlu0 %v1797_v45, %s3306_s23 }
0x11f1   :  { %v1896_v47 = vpop.permute.xlu1 %1895 }
0x11f2   :  { %v1898_v48 = vmul.f32 %v3226_v46, %v1896_v47 }
0x11f4   :  { %1900 = vrot.lane.b32.xlu1 %v1898_v48, %s3306_s23 }
0x1261   :  { %v1800_v50 = vpop.permute.xlu0 %1799 }
0x1262   :  { %v3723_v51 = vadd.f32 %v1800_v50, %v1792_v49 }
0x1264   :  { %3227 = vtanh.f32 %v3723_v51 }
0x1266   :  { %v1901_v54 = vpop.permute.xlu1 %1900 }
0x1267   :  { %v3727_v55 = vadd.f32 %v1901_v54, %v1893_v53 }
0x1269   :  { %3229 = vtanh.f32 %v3727_v55 }
0x126e   :  { %v3228_v56 = vpop.eup %3227 }
0x126f   :  { %1805 = vrot.lane.b32.xlu0 %v3228_v56, %s3306_s23 }
0x1273   :  { %v3230_v57 = vpop.eup %3229 }
0x1274   :  { %1906 = vrot.lane.b32.xlu1 %v3230_v57, %s3306_s23  ;;  %v2363_v57 = vld [vmem:[%s3841_s9 + $0x8] sm:$0xff] }
0x12e1   :  { %v1806_v58 = vpop.permute.xlu0 %1805 }
0x12e2   :  { %v1808_v59 = vmul.f32 %v3224_v40, %v1806_v58 }
0x12e4   :  { %1810 = vrot.lane.b32.xlu0 %v1808_v59, %s3307_s1  ;;  %v2364_v59 = vld [vmem:[%s3841_s9 + $0x10] sm:$0xff] }
0x12e6   :  { %v1907_v60 = vpop.permute.xlu1 %1906 }
0x12e7   :  { %v1909_v61 = vmul.f32 %v3226_v46, %v1907_v60  ;;  %v2365_v60 = vld [vmem:[%s3841_s9 + $0x18] sm:$0xff] }
0x12e9   :  { %1983 = vrot.lane.b32.xlu1 %v1909_v61, %s3307_s1  ;;  %v3114_v61 = vpack.c.bf16 %v2365_v60, %v2364_v59 }
0x1356   :  { %v1811_v62 = vpop.permute.xlu0 %1810 }
0x1357   :  { %1813 = vst.msk [vmem:[#allocation2 + $0xa] sm:$0x3] %vm447_vm4, %v1811_v62  ;;  %2909 = vmatmul.mubr.msk.f32.vlgmr.msra.gmra.mrb[20].mxu0 %vm164_vm3, %v1811_v62 }
0x1358   :  { %3094 = vmatpush3.bf16.msra.mxu0 %v3392_v4  ;;  %2930 = vmatprep.mubr.msk.f32.mxu0 %vm3304_vm2, %v3305_v10 }
0x1359   :  { %3095 = vmatprep.subr.bf16.mxu0 %v3303_v3 }
0x135b   :  { %v1984_v63 = vpop.permute.xlu1 %1983 }
0x135c   :  { %3097 = vmatpush3.bf16.msra.mxu0 %v3409_v9  ;;  %2920 = vmatmul.mubr.msk.f32.vlgmr.msra.gmra.mrb[20].mxu1 %vm164_vm3, %v1984_v63 }
0x135d   :  { %3104 = vmatprep.subr.bf16.mxu0 %v3303_v3  ;;  %3100 = vmatpush3.bf16.msra.mxu1 %v3451_v35 }
0x135e   :  { %3101 = vmatprep.subr.bf16.mxu1 %v3303_v3  ;;  %2941 = vmatprep.mubr.msk.f32.mxu1 %vm3304_vm2, %v3305_v10 }
0x135f   :  { %2931 = vmatmul.mubr.msk.f32.vlgmr.msra.gmra.mrb[22].mxu0 %vm164_vm3, %v1984_v63 }
0x1360   :  { %3106 = vmatpush3.bf16.msra.mxu0 %v3471_v42  ;;  %2952 = vmatprep.mubr.msk.f32.mxu0 %vm3304_vm2, %v3305_v10 }
0x1361   :  { %3107 = vmatprep.subr.bf16.mxu0 %v3303_v3  ;;  %3103 = vmatpush3.bf16.msra.mxu1 %v3469_v41 }
0x1364   :  { %3109 = vmatpush3.bf16.msra.mxu0 %v3475_v43 }
0x142a   :  { %v1978_v4 = vpop.f32.mrb[20].mxu0 }
0x142b   :  { %v2910_v9 = vpop.f32.mrb[21].mxu0 }
0x142f   :  { %v2053_v35 = vpop.f32.mrb[20].mxu1 }
0x1430   :  { %v2054_v0 = vadd.f32 %v2053_v35, %v1978_v4  ;;  %v2921_v1 = vpop.f32.mrb[21].mxu1 }
0x1432   :  { %v2057_v5 = vadd.f32 %v3512_v52, %v2054_v0  ;;  %v2155_v6 = vpop.f32.mrb[22].mxu0 }
0x1433   :  { %v2156_v42 = vadd.f32 %v2155_v6, %v2087_v2  ;;  %v2932_v7 = vpop.f32.mrb[23].mxu0 }
0x1434   :  { %3231 = vtanh.f32 %v2057_v5  ;;  %v2548_v41 = vmul.f32 -1.442695, %v2057_v5 }
0x1435   :  { %3233 = vtanh.f32 %v2156_v42  ;;  %v2550_v43 = vmul.f32 -1.442695, %v2156_v42 }
0x1436   :  { %3235 = vpow2.f32 %v2548_v41 }
0x1437   :  { %3237 = vpow2.f32 %v2550_v43 }
0x143e   :  { %v3232_v10 = vpop.eup %3231 }
0x143f   :  { %v3234_v3 = vpop.eup %3233  ;;  %2067 = vrot.lane.b32.xlu0 %v3232_v10, %s3306_s23 }
0x1440   :  { %2168 = vrot.lane.b32.xlu1 %v3234_v3, %s3306_s23  ;;  %v3236_v8 = vpop.eup %3235 }
0x1441   :  { %v3238_v11 = vpop.eup %3237  ;;  %v2061_v14 = vadd.f32 1.0, %v3236_v8 }
0x1442   :  { %v2162_v12 = vadd.f32 1.0, %v3238_v11 }
0x1443   :  { %3239 = vrcp.f32 %v2061_v14 }
0x1444   :  { %3241 = vrcp.f32 %v2162_v12 }
0x144d   :  { %v3240_v13 = vpop.eup %3239 }
0x144e   :  { %v3242_v17 = vpop.eup %3241  ;;  %v2065_v21 = vmul.f32 %v3240_v13, %v3723_v51 }
0x144f   :  { %v2166_v22 = vmul.f32 %v3242_v17, %v3727_v55 }
0x14b1   :  { %v2068_v15 = vpop.permute.xlu0 %2067 }
0x14b2   :  { %v2169_v18 = vpop.permute.xlu1 %2168  ;;  %v2070_v19 = vmul.f32 %v3240_v13, %v2068_v15 }
0x14b3   :  { %v2171_v20 = vmul.f32 %v3242_v17, %v2169_v18 }
0x14b4   :  { %2072 = vrot.lane.b32.xlu0 %v2070_v19, %s3306_s23 }
0x14b5   :  { %2173 = vrot.lane.b32.xlu1 %v2171_v20, %s3306_s23 }
0x1526   :  { %v2073_v23 = vpop.permute.xlu0 %2072 }
0x1527   :  { %v2174_v24 = vpop.permute.xlu1 %2173  ;;  %v2075_v25 = vadd.f32 %v2073_v23, %v2065_v21 }
0x1528   :  { %v2176_v26 = vadd.f32 %v2174_v24, %v2166_v22 }
0x1529   :  { %3243 = vtanh.f32 %v2075_v25 }
0x152a   :  { %3245 = vtanh.f32 %v2176_v26 }
0x1533   :  { %v3244_v27 = vpop.eup %3243 }
0x1534   :  { %v3246_v28 = vpop.eup %3245  ;;  %2078 = vrot.lane.b32.xlu0 %v3244_v27, %s3306_s23 }
0x1535   :  { %2179 = vrot.lane.b32.xlu1 %v3246_v28, %s3306_s23 }
0x15a6   :  { %v2079_v29 = vpop.permute.xlu0 %2078 }
0x15a7   :  { %v2180_v30 = vpop.permute.xlu1 %2179  ;;  %v2081_v31 = vmul.f32 %v3240_v13, %v2079_v29 }
0x15a8   :  { %v2182_v32 = vmul.f32 %v3242_v17, %v2180_v30 }
0x15a9   :  { %2083 = vrot.lane.b32.xlu0 %v2081_v31, %s3307_s1 }
0x15aa   :  { %2256 = vrot.lane.b32.xlu1 %v2182_v32, %s3307_s1 }
0x161b   :  { %v2084_v16 = vpop.permute.xlu0 %2083 }
0x161c   :  { %v2257_v33 = vpop.permute.xlu1 %2256  ;;  %2086 = vst.msk [vmem:[#allocation2 + $0xc] sm:$0x3] %vm447_vm4, %v2084_v16  ;;  %2942 = vmatmul.mubr.msk.f32.vlgmr.msra.gmra.mrb[22].mxu1 %vm164_vm3, %v2084_v16 }
0x161d   :  { %2457 = vst.msk [vmem:[#allocation3] sm:$0x3] %vm447_vm4, %v2257_v33  ;;  %2953 = vmatmul.mubr.msk.f32.vlgmr.msra.gmra.mrb[24].mxu0 %vm164_vm3, %v2257_v33  ;;  %2963 = vmatprep.mubr.msk.f32.mxu1 %vm164_vm3, %v2360_v34 }
0x16ef   :  { %v2251_v36 = vpop.f32.mrb[22].mxu1 }
0x16f0   :  { %v2326_v37 = vpop.f32.mrb[24].mxu0  ;;  %v2943_v38 = vpop.f32.mrb[23].mxu1 }
0x16f1   :  { %v2327_v39 = vadd.f32 %v2326_v37, %v2251_v36  ;;  %v2954_v40 = vpop.f32.mrb[25].mxu0 }
0x16f3   :  { %v2330_v44 = vadd.f32 %v3512_v52, %v2327_v39  ;;  %v2362_v52 = vld [vmem:[%s3841_s9] sm:$0xff]  ;;  %s3309_s9 = smov [#allocation3]  }
0x16f4   :  { %v3110_v58 = vpack.c.bf16 %v2363_v57, %v2362_v52  ;;  %s2478_s15 = sshll.u32 %s3309_s9, 4  ;;  %s2479_s15 = int_to_ptr.vmem [resolvable:$true] %s2478_s15 }
0x16f5   :  { %3247 = vtanh.f32 %v2330_v44  ;;  %v2553_v46 = vmul.f32 -1.442695, %v2330_v44  ;;  %s3255_s18 = scalar_lea.vmem %s2479_s15, 64  ;;  %p3260_p1 = scmp.lt.s32.totalorder %s2479_s15, %s2479_s15 }
0x16f6   :  { %3111 = vmatprep.subr.bf16.mxu1 %v3110_v58  ;;  %p3256_p0 = scmp.ne.s32.totalorder %s2479_s15, %s3255_s18  ;;  %p3261_p2 = scmp.lt.s32.totalorder %s3255_s18, %s3255_s18 }
0x16f7   :  { %3249 = vpow2.f32 %v2553_v46  ;;  %3113 = vmatpush3.bf16.msra.mxu1 %v3110_v58 }
0x16f8   :  { %3115 = vmatprep.subr.bf16.mxu1 %v3114_v61  ;;  %p3262_p3 = por %p3261_p2, %p3260_p1 }
0x16fa   :  { %p3263_p4 = pnand %p3262_p3, %p3256_p0 }
0x16fb   :  { %3117 = vmatpush3.bf16.msra.mxu1 %v3114_v61 }
0x16ff   :  { %v3248_v45 = vpop.eup %3247 }
0x1700   :  { %2340 = vrot.lane.b32.xlu0 %v3248_v45, %s3306_s23 }
0x1701   :  { %v3250_v47 = vpop.eup %3249 }
0x1702   :  { %v2334_v48 = vadd.f32 1.0, %v3250_v47 }
0x1704   :  { %3251 = vrcp.f32 %v2334_v48 }
0x170e   :  { %v3252_v49 = vpop.eup %3251 }
0x170f   :  { %v2338_v53 = vmul.f32 %v3252_v49, %v2075_v25 }
0x1772   :  { %v2341_v50 = vpop.permute.xlu0 %2340 }
0x1773   :  { %v2343_v51 = vmul.f32 %v3252_v49, %v2341_v50 }
0x1775   :  { %2345 = vrot.lane.b32.xlu1 %v2343_v51, %s3306_s23 }
0x17e7   :  { %v2346_v54 = vpop.permute.xlu1 %2345 }
0x17e8   :  { %v2348_v55 = vadd.f32 %v2346_v54, %v2338_v53 }
0x17ea   :  { %3253 = vtanh.f32 %v2348_v55 }
0x17f4   :  { %v3254_v56 = vpop.eup %3253 }
0x17f5   :  { %2351 = vrot.lane.b32.xlu0 %v3254_v56, %s3306_s23 }
0x17f9   :  { %2461 = vrot.lane.b32.xlu0 %v2176_v26, %s3308_s2 }
0x1867   :  { %v2352_v62 = vpop.permute.xlu0 %2351 }
0x1868   :  { %v2354_v63 = vmul.f32 %v3252_v49, %v2352_v62 }
0x186a   :  { %2356 = vrot.lane.b32.xlu1 %v2354_v63, %s3307_s1 }
0x186b   :  { %v2462_v4 = vpop.permute.xlu0 %2461 }
0x186c   :  { %2464 = vst.msk [vmem:[#allocation5] sm:$0x3] %vm447_vm4, %v2462_v4 }
0x186e   :  { %2466 = vrot.lane.b32.xlu1 %v2348_v55, %s3308_s2 }
0x18dc   :  { %v2357_v9 = vpop.permute.xlu1 %2356 }
0x18dd   :  { %2359 = vst.msk [vmem:[#allocation2 + $0xe] sm:$0x3] %vm447_vm4, %v2357_v9  ;;  %2459 = vst.msk [vmem:[#allocation3 + $0x2] sm:$0x3] %vm447_vm4, %v2357_v9 }
0x18e0   :  { %v2467_v35 = vpop.permute.xlu1 %2466 }
0x18e1   :  { %2470 = vst.msk [vmem:[#allocation5 + $0x2] sm:$0x3] %vm447_vm4, %v2467_v35 }
0x18e4   :  { %v2361_v0 = vld [vmem:[#allocation2 + $0x8] sm:$0xff] }
0x18e5   :  { %2964 = vmatmul.mubr.msk.f32.vlgmr.msra.gmra.mrb[24].mxu1 %vm164_vm3, %v2361_v0 }
0x18e6   :  { %3266 = shalt.err (!%p3263_p4)
}
0x18e7   :  { %s3267_s20 = scalar_lea.hbm %s3844_s12, 64 }
0x18e8   :  { %p3268_p5 = scmp.ne.s32.totalorder %s3844_s12, %s3267_s20  ;;  %p3271_p6 = scmp.lt.u32.totalorder %s3267_s20, %s3844_s12 }
0x18ea   :  { %p3273_p7 = pnand %p3271_p6, %p3268_p5 }
0x18ec   :  { %3276 = shalt.err (!%p3273_p7)
}
0x18ed   :  { %s3311_s1 = smov 2   ;;  %s3277_s24 = scalar_lea.vmem %s2491_s17, 64 }
0x18ee   :  { %2484 = dma.vmem_to_hbm [thread:$0]  %s2479_s15, 64, %s3844_s12, [#allocation4], %s3306_s23, %s3306_s23, %s3311_s1  }
0x18ef   :  { %p3278_p8 = scmp.ne.s32.totalorder %s2491_s17, %s3277_s24  ;;  %p3282_p9 = scmp.lt.s32.totalorder %s2491_s17, %s2491_s17 }
0x18f0   :  { %p3283_p10 = scmp.lt.s32.totalorder %s3277_s24, %s3277_s24 }
0x18f2   :  { %p3284_p11 = por %p3283_p10, %p3282_p9 }
0x18f4   :  { %p3285_p12 = pnand %p3284_p11, %p3278_p8 }
0x18f6   :  { %3288 = shalt.err (!%p3285_p12)
}
0x18f7   :  { %s3289_s8 = scalar_lea.hbm %s3845_s13, 64 }
0x18f8   :  { %p3290_p13 = scmp.ne.s32.totalorder %s3845_s13, %s3289_s8  ;;  %p3293_p0 = scmp.lt.u32.totalorder %s3289_s8, %s3845_s13 }
0x18fa   :  { %p3295_p1 = pnand %p3293_p0, %p3290_p13 }
0x18fc   :  { %3298 = shalt.err (!%p3295_p1)
}
0x18fd   :  { %2496 = dma.vmem_to_hbm [thread:$0]  %s2491_s17, 64, %s3845_s13, [#allocation6], %s3306_s23, %s3306_s23, %s3311_s1  }
0x18fe   :  { %v2554_v1 = vld [vmem:[%s3842_s10] ss:$0 sm:$0xff] }
0x19b8   :  { %v2965_v2 = vpop.f32.mrb[24].mxu1 }
0x19b9   :  { %v2451_v5 = vadd.f32 %v2965_v2, %v2554_v1  ;;  %v2445_v6 = vpop.f32.mrb[25].mxu1 }
0x19ba   :  { %v2446_v42 = vadd.f32 %v2554_v1, %v2445_v6 }
0x19bb   :  { %2455 = vst.msk [vmem:[%s3843_s11 + $0x8] sm:$0xff] %vm65_vm1, %v2451_v5 }
0x19bc   :  { %2454 = vst.msk [vmem:[%s3843_s11] sm:$0xff] %vm65_vm1, %v2446_v42 }
0x19bd   :  { %3299 = dma.done.wait [#allocation4], 64  }
0x19be   :  { %3300 = vsyncadd [#allocation4], 4294967232 }
0x19bf   :  { %3301 = dma.done.wait [#allocation6], 64  }
0x19c0   :  { %3302 = vsyncadd [#allocation6], 4294967232 }
0x19c1   :  { %2505 = vsyncpa [#allocation4], 1 }
0x19c2   :  { %2506 = vsyncpa [#allocation6], 1 }

</bundles_post_ra>
